<compile_context>
chip_gen: v7x
topology: tpu7x:2x2x1
jax: 0.10.0
libtpu: 0.0.40
codegen_flags: <defaults>
</compile_context>

<pallas_src>
import jax
import jax.numpy as jnp
from jax import lax
from jax.experimental import pallas as pl
from jax.experimental.pallas import tpu as pltpu

NUM_MEMORIES = 100
MEM_PAD = 128                        # lane-aligned memory-slot count (zero padded)
FEATURE_SIZE = 256 * 4 * 4           # 4096
THRESHOLD = 1.0 / NUM_MEMORIES       # matches self.threshold = 1 / memory.size(0)
EPSILON = 1e-15                      # matches self.epsilon
COS_EPS = 1e-8                       # nn.CosineSimilarity default eps


def _round_up(x, m):
    return (x + m - 1) // m * m


# ----------------------------------------------------------------------------
# Pallas kernel: memory addressing
#   cosine sim -> masked softmax -> hard shrink -> L1 norm -> z_hat = w @ mem
# ----------------------------------------------------------------------------
def memaut_memory_kernel(z_ref, memn_ref, mnorm_ref, zhat_ref):
    z = z_ref[...]                    # (TB, F)       bf16
    mem_n = memn_ref[...]             # (MEM_PAD, F)  bf16, unit-L2 rows (pre-normed)
    m_norm = mnorm_ref[...]           # (1, MEM_PAD)  f32, original row L2 norms

    # ||z||^-1 (f32 reduction; clamp plays the role of the CosineSimilarity eps
    # and also guards the zero-padded batch rows).
    zf = z.astype(jnp.float32)
    inv_z = lax.rsqrt(jnp.maximum(jnp.sum(zf * zf, axis=-1, keepdims=True),
                                  COS_EPS * COS_EPS))                  # (TB, 1)

    # cosine similarity = (z . m_n) / ||z||: one bf16 MXU matmul, f32 accumulate.
    dots = lax.dot_general(z, mem_n, (((1,), (1,)), ((), ())),
                           preferred_element_type=jnp.float32)         # (TB, MEM_PAD)
    sim = dots * inv_z

    # Mask the zero-padded memory slots out of the softmax.
    col = lax.broadcasted_iota(jnp.int32, sim.shape, 1)
    sim = jnp.where(col < NUM_MEMORIES, sim, -jnp.inf)

    # softmax over memories (dim=1) — small (TB,128) block, keep f32.
    s_max = jnp.max(sim, axis=-1, keepdims=True)
    e = jnp.exp(sim - s_max)
    w = e * pl.reciprocal(jnp.sum(e, axis=-1, keepdims=True), approx=True)

    # hard shrinkage: relu(w - thr) * w / (|w - thr| + eps)
    d = w - THRESHOLD
    w = jnp.maximum(d, 0.0) * w / (jnp.abs(d) + EPSILON)

    # L1 re-normalization over memories (exact reciprocal; clamped NaN guard).
    l1 = jnp.maximum(jnp.sum(jnp.abs(w), axis=-1, keepdims=True), 1e-12)
    w = w * pl.reciprocal(l1, approx=False)

    # z_hat = w @ memory = (w * ||m||) @ mem_n   (norm fold-in AFTER L1 norm;
    # padded rows have ||m|| = 0 and zero weight). bf16 operands on the MXU.
    w_scaled = (w * m_norm).astype(jnp.bfloat16)
    zhat_ref[...] = jnp.dot(w_scaled, mem_n,
                            preferred_element_type=jnp.float32
                            ).astype(zhat_ref.dtype)


def memory_addressing(z, mem_n, m_norm):
    """z: (B, F) f32, mem_n: (MEM_PAD, F) bf16 unit rows, m_norm: (1, MEM_PAD) f32
    -> (B, F) bf16."""
    b, f = z.shape
    m_pad, f2 = mem_n.shape
    assert f == f2 and m_pad == MEM_PAD

    # Batch tile: sublane-aligned, capped at 512 rows, and sized so the grid has
    # at least 2 steps when possible (lets the "parallel" axis shard across both
    # v7x TensorCores; v5e/v6e just get roofline-friendly big tiles).
    tb = min(512, _round_up(max(-(-b // 2), 1), 8))
    b_pad = _round_up(b, tb)
    if b_pad != b:
        z = jnp.pad(z, ((0, b_pad - b), (0, 0)))
    z = z.astype(jnp.bfloat16)

    # VMEM budget: 2x double-buffered bf16 z tile + 2x bf16 out tile + resident
    # bf16 bank + headroom (~25 MiB at tb=512 — safe on v7x's 64 MiB VMEM).
    bank_bytes = m_pad * f * 2
    tile_bytes = tb * f * 2
    vmem_limit = int(bank_bytes + 4 * tile_bytes + (8 << 20))

    cost = pl.CostEstimate(
        flops=int(4 * b_pad * f * m_pad),                 # two (TB,F)x(F/MEM) matmuls
        transcendentals=int(b_pad * (m_pad + 4)),         # exp + rsqrt/recip
        bytes_accessed=int(2 * b_pad * f * 2 + bank_bytes + m_pad * 4),
    )

    out = pl.pallas_call(
        memaut_memory_kernel,
        out_shape=jax.ShapeDtypeStruct((b_pad, f), jnp.bfloat16),
        grid_spec=pltpu.PrefetchScalarGridSpec(
            num_scalar_prefetch=0,
            grid=(b_pad // tb,),
            in_specs=[
                pl.BlockSpec((tb, f), lambda i: (i, 0)),              # z tile (pipelined)
                pl.BlockSpec((m_pad, f), lambda i: (0, 0),
                             pipeline_mode=pl.Buffered(1)),           # bank: resident, 1-buf
                pl.BlockSpec((1, m_pad), lambda i: (0, 0),
                             pipeline_mode=pl.Buffered(1)),           # row norms: resident
            ],
            out_specs=pl.BlockSpec((tb, f), lambda i: (i, 0)),
        ),
        compiler_params=pltpu.CompilerParams(
            dimension_semantics=("parallel",),                        # megacore on v7x
            vmem_limit_bytes=vmem_limit,
        ),
        cost_estimate=cost,
    )(z, mem_n, m_norm)
    return out[:b]


# ----------------------------------------------------------------------------
# Encoder / Decoder glue (plain JAX, NHWC internally) — deterministic stand-ins
# ----------------------------------------------------------------------------
def conv2d_nhwc(x, w, b, stride):
    # x: NHWC, w: HWIO, 3x3 kernels, padding 1
    y = lax.conv_general_dilated(
        x, w, (stride, stride), padding=((1, 1), (1, 1)),
        dimension_numbers=("NHWC", "HWIO", "NHWC"))
    return y + b[None, None, None, :]


def upsample2x_nhwc(x):
    # nearest-neighbor 2x via broadcast (cheaper than repeat chains)
    b, h, w, c = x.shape
    x = jnp.broadcast_to(x[:, :, None, :, None, :], (b, h, 2, w, 2, c))
    return x.reshape(b, 2 * h, 2 * w, c)


def init_params(key):
    keys = jax.random.split(key, 7)

    def conv_w(k, kh, kw, i, o):
        fan_in = i * kh * kw
        return jax.random.normal(k, (kh, kw, i, o), jnp.float32) * jnp.sqrt(2.0 / fan_in)

    # nn.init.kaiming_normal_ on (100, 4096): std = sqrt(2 / fan_in), fan_in = 4096.
    # NOTE: the bank's 4096 features are laid out in NHWC-flatten order (matching
    # the stand-in encoder's h.reshape(b,-1)); the iid kaiming init makes this
    # distribution-equivalent to the PyTorch NCHW-flatten convention and removes
    # two (B,4096) transposes around the Pallas kernel.
    mem = (jax.random.normal(keys[6], (NUM_MEMORIES, FEATURE_SIZE), jnp.float32)
           * jnp.sqrt(2.0 / FEATURE_SIZE))
    row_sq = jnp.sum(mem * mem, axis=-1, keepdims=True)                # (100, 1)
    m_norm = jnp.sqrt(row_sq)                                          # original ||m||
    mem_n = mem * lax.rsqrt(jnp.maximum(row_sq, COS_EPS * COS_EPS))    # unit-L2 rows
    mem_n = jnp.pad(mem_n, ((0, MEM_PAD - NUM_MEMORIES), (0, 0))).astype(jnp.bfloat16)
    m_norm = jnp.pad(m_norm, ((0, MEM_PAD - NUM_MEMORIES), (0, 0)))
    m_norm = m_norm.reshape(1, MEM_PAD).astype(jnp.float32)            # padded rows -> 0

    params = {
        "enc": [
            (conv_w(keys[0], 3, 3, 3, 64),    jnp.zeros((64,),  jnp.float32)),
            (conv_w(keys[1], 3, 3, 64, 128),  jnp.zeros((128,), jnp.float32)),
            (conv_w(keys[2], 3, 3, 128, 256), jnp.zeros((256,), jnp.float32)),
        ],
        "dec": [
            (conv_w(keys[3], 3, 3, 256, 128), jnp.zeros((128,), jnp.float32)),
            (conv_w(keys[4], 3, 3, 128, 64),  jnp.zeros((64,),  jnp.float32)),
            (conv_w(keys[5], 3, 3, 64, 3),    jnp.zeros((3,),   jnp.float32)),
        ],
        "memory_normed": mem_n,    # (128, 4096) bf16, unit-L2 rows, zero-padded
        "memory_norms": m_norm,    # (1, 128)    f32, original row norms
    }
    return params


def memaut_forward(params, x):
    b = x.shape[0]

    # Encoder: 32 -> 16 -> 8 -> 4 spatial, channels 3 -> 64 -> 128 -> 256
    h = jnp.transpose(x, (0, 2, 3, 1))                        # NCHW -> NHWC
    for i, (w, bias) in enumerate(params["enc"]):
        h = conv2d_nhwc(h, w, bias, stride=2)
        if i < len(params["enc"]) - 1:
            h = jax.nn.relu(h)

    # NHWC flatten — bank features are stored in the matching order.
    z = h.reshape(b, -1)                                      # (b, 4096)

    # Memory addressing (Pallas kernel) — bf16 in / bf16 out
    z_hat = memory_addressing(z, params["memory_normed"], params["memory_norms"])

    # Decoder: 4 -> 8 -> 16 -> 32 spatial, channels 256 -> 128 -> 64 -> 3
    h = z_hat.astype(jnp.float32).reshape(b, 4, 4, 256)       # already NHWC order
    for i, (w, bias) in enumerate(params["dec"]):
        h = upsample2x_nhwc(h)
        h = conv2d_nhwc(h, w, bias, stride=1)
        if i < len(params["dec"]) - 1:
            h = jax.nn.relu(h)
    return jnp.transpose(h, (0, 3, 1, 2))                     # back to NCHW


if __name__ == "__main__":
    key = jax.random.PRNGKey(0)
    pkey, xkey = jax.random.split(key)
    params = init_params(pkey)
    x = jax.random.normal(xkey, (2, 3, 32, 32), jnp.float32)   # NCHW, like PyTorch

    fwd = jax.jit(memaut_forward)
    rec_x = fwd(params, x)
    jax.block_until_ready(rec_x)

    assert rec_x.shape == (2, 3, 32, 32), rec_x.shape
    assert jnp.all(jnp.isfinite(rec_x))
    print("KERNEL_OK")
</pallas_src>

<mosaic_0001>
module attributes {stable_mosaic.version = 11 : i64} {
  func.func @memaut_memory_kernel(%arg0: i32, %arg1: memref<8x4096xbf16, #tpu.memory_space<vmem>>, %arg2: memref<128x4096xbf16, #tpu.memory_space<vmem>>, %arg3: memref<1x128xf32, #tpu.memory_space<vmem>>, %arg4: memref<8x4096xbf16, #tpu.memory_space<vmem>>) attributes {dimension_semantics = [#tpu.dimension_semantics<parallel>], iteration_bounds = array<i64: 1>, scalar_prefetch = 0 : i64, scratch_operands = 0 : i64, tpu.core_type = #tpu.core_type<tc>, window_params = [{transform_indices = @transform_0, window_bounds = array<i64: 8, 4096>}, {pipeline_mode = #tpu.pipeline_mode<synchronous>, transform_indices = @transform_1, window_bounds = array<i64: 128, 4096>}, {pipeline_mode = #tpu.pipeline_mode<synchronous>, transform_indices = @transform_2, window_bounds = array<i64: 1, 128>}, {transform_indices = @transform_3, window_bounds = array<i64: 8, 4096>}]} {
    %c0 = arith.constant 0 : index
    %c0_0 = arith.constant 0 : index
    %0 = vector.load %arg1[%c0, %c0_0] : memref<8x4096xbf16, #tpu.memory_space<vmem>>, vector<8x4096xbf16>
    %c0_1 = arith.constant 0 : index
    %c0_2 = arith.constant 0 : index
    %1 = vector.load %arg2[%c0_1, %c0_2] : memref<128x4096xbf16, #tpu.memory_space<vmem>>, vector<128x4096xbf16>
    %c0_3 = arith.constant 0 : index
    %c0_4 = arith.constant 0 : index
    %2 = vector.load %arg3[%c0_3, %c0_4] : memref<1x128xf32, #tpu.memory_space<vmem>>, vector<1x128xf32>
    %3 = arith.extf %0 : vector<8x4096xbf16> to vector<8x4096xf32>
    %4 = arith.mulf %3, %3 : vector<8x4096xf32>
    %cst = arith.constant dense<0.000000e+00> : vector<8xf32>
    %5 = vector.multi_reduction <add>, %4, %cst [1] : vector<8x4096xf32> to vector<8xf32>
    %6 = vector.shape_cast %5 : vector<8xf32> to vector<8x1xf32>
    %cst_5 = arith.constant 1.000000e-16 : f32
    %7 = vector.broadcast %cst_5 : f32 to vector<8x1xf32>
    %8 = arith.maximumf %6, %7 : vector<8x1xf32>
    %9 = math.rsqrt %8 : vector<8x1xf32>
    %cst_6 = arith.constant dense<0.000000e+00> : vector<8x128xf32>
    %10 = tpu.matmul %0, %1, %cst_6 {dimension_numbers = #tpu.dot_dimension_numbers<[1], [1], [0], [0], [0, 0, 1, 0], [], []>} : vector<8x4096xbf16>, vector<128x4096xbf16>, vector<8x128xf32> -> vector<8x128xf32>
    %11 = vector.broadcast %9 : vector<8x1xf32> to vector<8x128xf32>
    %12 = arith.mulf %10, %11 : vector<8x128xf32>
    %13 = tpu.iota {dimensions = array<i32: 1>} : vector<8x128xi32>
    %c100_i32 = arith.constant 100 : i32
    %14 = vector.broadcast %c100_i32 : i32 to vector<8x128xi32>
    %15 = arith.cmpi slt, %13, %14 : vector<8x128xi32>
    %cst_7 = arith.constant 0xFF800000 : f32
    %16 = vector.broadcast %cst_7 : f32 to vector<8x128xf32>
    %17 = arith.select %15, %12, %16 : vector<8x128xi1>, vector<8x128xf32>
    %cst_8 = arith.constant dense<0xFF800000> : vector<8xf32>
    %18 = vector.multi_reduction <maximumf>, %17, %cst_8 [1] : vector<8x128xf32> to vector<8xf32>
    %19 = vector.shape_cast %18 : vector<8xf32> to vector<8x1xf32>
    %20 = vector.broadcast %19 : vector<8x1xf32> to vector<8x128xf32>
    %21 = arith.subf %17, %20 : vector<8x128xf32>
    %22 = math.exp %21 : vector<8x128xf32>
    %cst_9 = arith.constant dense<0.000000e+00> : vector<8xf32>
    %23 = vector.multi_reduction <add>, %22, %cst_9 [1] : vector<8x128xf32> to vector<8xf32>
    %24 = vector.shape_cast %23 : vector<8xf32> to vector<8x1xf32>
    %25 = tpu.reciprocal %24 {approx = true} : vector<8x1xf32> -> vector<8x1xf32>
    %26 = vector.broadcast %25 : vector<8x1xf32> to vector<8x128xf32>
    %27 = arith.mulf %22, %26 : vector<8x128xf32>
    %cst_10 = arith.constant 0.00999999977 : f32
    %28 = vector.broadcast %cst_10 : f32 to vector<8x128xf32>
    %29 = arith.subf %27, %28 : vector<8x128xf32>
    %cst_11 = arith.constant 0.000000e+00 : f32
    %30 = vector.broadcast %cst_11 : f32 to vector<8x128xf32>
    %31 = arith.maximumf %29, %30 : vector<8x128xf32>
    %32 = arith.mulf %31, %27 : vector<8x128xf32>
    %33 = math.absf %29 : vector<8x128xf32>
    %cst_12 = arith.constant 1.000000e-15 : f32
    %34 = vector.broadcast %cst_12 : f32 to vector<8x128xf32>
    %35 = arith.addf %33, %34 : vector<8x128xf32>
    %36 = arith.divf %32, %35 : vector<8x128xf32>
    %37 = math.absf %36 : vector<8x128xf32>
    %cst_13 = arith.constant dense<0.000000e+00> : vector<8xf32>
    %38 = vector.multi_reduction <add>, %37, %cst_13 [1] : vector<8x128xf32> to vector<8xf32>
    %39 = vector.shape_cast %38 : vector<8xf32> to vector<8x1xf32>
    %cst_14 = arith.constant 9.99999996E-13 : f32
    %40 = vector.broadcast %cst_14 : f32 to vector<8x1xf32>
    %41 = arith.maximumf %39, %40 : vector<8x1xf32>
    %42 = tpu.reciprocal %41 : vector<8x1xf32> -> vector<8x1xf32>
    %43 = vector.broadcast %42 : vector<8x1xf32> to vector<8x128xf32>
    %44 = arith.mulf %36, %43 : vector<8x128xf32>
    %45 = vector.broadcast %2 : vector<1x128xf32> to vector<8x128xf32>
    %46 = arith.mulf %44, %45 : vector<8x128xf32>
    %47 = arith.truncf %46 : vector<8x128xf32> to vector<8x128xbf16>
    %cst_15 = arith.constant dense<0.000000e+00> : vector<8x4096xf32>
    %48 = tpu.matmul %47, %1, %cst_15 {dimension_numbers = #tpu.dot_dimension_numbers<[1], [0], [0], [1], [0, 0, 1, 1], [], []>} : vector<8x128xbf16>, vector<128x4096xbf16>, vector<8x4096xf32> -> vector<8x4096xf32>
    %49 = arith.truncf %48 : vector<8x4096xf32> to vector<8x4096xbf16>
    %c0_16 = arith.constant 0 : index
    %c0_17 = arith.constant 0 : index
    %50 = vector.load %arg4[%c0_16, %c0_17] : memref<8x4096xbf16, #tpu.memory_space<vmem>>, vector<8x4096xbf16>
    tpu.vector_store %arg4[%c0_16, %c0_17], %49 {strides = array<i32>} : memref<8x4096xbf16, #tpu.memory_space<vmem>>, vector<8x4096xbf16>,
    return
  }
  func.func @transform_0(%arg0: i32) -> (i32, i32) {
    %c0_i32 = arith.constant 0 : i32
    %c0_i32_0 = arith.constant 0 : i32
    return %arg0, %c0_i32 : i32, i32
  }
  func.func @transform_1(%arg0: i32) -> (i32, i32) {
    %c0_i32 = arith.constant 0 : i32
    %c0_i32_0 = arith.constant 0 : i32
    %c0_i32_1 = arith.constant 0 : i32
    return %c0_i32, %c0_i32_0 : i32, i32
  }
  func.func @transform_2(%arg0: i32) -> (i32, i32) {
    %c0_i32 = arith.constant 0 : i32
    %c0_i32_0 = arith.constant 0 : i32
    %c0_i32_1 = arith.constant 0 : i32
    return %c0_i32, %c0_i32_0 : i32, i32
  }
  func.func @transform_3(%arg0: i32) -> (i32, i32) {
    %c0_i32 = arith.constant 0 : i32
    %c0_i32_0 = arith.constant 0 : i32
    return %arg0, %c0_i32 : i32, i32
  }
}

</mosaic_0001>

<bundles_post_ra>
// kernel: memaut_forward.1
= control target key start
LH: loop header
LB: loop body
LE: loop exit
PB: predicated region body
PF: predicated region fallthrough
CT: control target
= control target key end

     0   :  { %s5738_s1 = inlined_call_operand.vmem [shape: bf16[128,4096], index: 1, kind: input, shape index: {}]   ;;  %s5739_s0 = inlined_call_operand.vmem [shape: bf16[8,4096], index: 0, kind: input, shape index: {}]   ;;  %s5740_s2 = inlined_call_operand.vmem [shape: f32[1,128], index: 2, kind: input, shape index: {}]   ;;  %s5741_s3 = inlined_call_operand.vmem [shape: bf16[8,4096], index: 3, kind: output, shape index: {}]  }
   0x1   :  { %v35_v0 = vld [vmem:[%s5738_s1 + $0x20] sm:$0xff]  ;;  %v36_v33 = vld [vmem:[%s5738_s1 + $0x28] sm:$0xff] }
   0x2   :  { %v51_v1 = vld [vmem:[%s5738_s1 + $0xa0] sm:$0xff]  ;;  %v52_v34 = vld [vmem:[%s5738_s1 + $0xa8] sm:$0xff] }
   0x3   :  { %v67_v2 = vld [vmem:[%s5738_s1 + $0x120] sm:$0xff]  ;;  %v3714_v3 = vcombine.high %v35_v0, %v51_v1  ;;  %v3716_v4 = vcombine.low %v35_v0, %v51_v1  ;;  %v3809_v36 = vcombine.high %v36_v33, %v52_v34  ;;  %v20_v37 = vld [vmem:[%s5739_s0 + $0x28] sm:$0xff]  ;;  %v3822_v41 = vcombine.low %v36_v33, %v52_v34  ;;  %v133_v34 = vld [vmem:[%s5738_s1 + $0x330] sm:$0xff] }
   0x4   :  { %v83_v5 = vld [vmem:[%s5738_s1 + $0x1a0] sm:$0xff]  ;;  %v68_v38 = vld [vmem:[%s5738_s1 + $0x128] sm:$0xff]  ;;  %v3269_v42 = vcombine.high %v20_v37, %v20_v37 }
   0x5   :  { %5936 = vst [vmem:[#allocation2_spill] sm:$0xff] %v3714_v3  ;;  %5937 = vst [vmem:[#allocation3_spill] sm:$0xff] %v3716_v4  ;;  %v3721_v6 = vcombine.high %v67_v2, %v83_v5  ;;  %1939 = vmatprep.subr.bf16.mxu0 %v3714_v3  ;;  %v19_v7 = vld [vmem:[%s5739_s0 + $0x20] sm:$0xff]  ;;  %v3735_v11 = vcombine.low %v67_v2, %v83_v5  ;;  %v84_v39 = vld [vmem:[%s5738_s1 + $0x1a8] sm:$0xff] }
   0x6   :  { %1940 = vmatpush1.bf16.xpose.msra.mxu0 %v3716_v4  ;;  %v99_v8 = vld [vmem:[%s5738_s1 + $0x220] sm:$0xff]  ;;  %v3267_v10 = vcombine.high %v19_v7, %v19_v7  ;;  %5952 = vst [vmem:[#allocation18_spill] sm:$0xff] %v3809_v36  ;;  %v3266_v40 = vcombine.low %v19_v7, %v19_v7  ;;  %5953 = vst [vmem:[#allocation19_spill] sm:$0xff] %v3822_v41  ;;  %v3824_v43 = vcombine.high %v68_v38, %v84_v39  ;;  %v100_v44 = vld [vmem:[%s5738_s1 + $0x228] sm:$0xff] }
   0x7   :  { %5938 = vst [vmem:[#allocation4_spill] sm:$0xff] %v3721_v6  ;;  %1941 = vmatprep.subr.bf16.mxu0 %v3721_v6  ;;  %v115_v9 = vld [vmem:[%s5738_s1 + $0x2a0] sm:$0xff]  ;;  %5939 = vst [vmem:[#allocation5_spill] sm:$0xff] %v3735_v11  ;;  %v116_v45 = vld [vmem:[%s5738_s1 + $0x2a8] sm:$0xff]  ;;  %v3834_v46 = vcombine.low %v68_v38, %v84_v39 }
   0x8   :  { %v3737_v12 = vcombine.high %v99_v8, %v115_v9  ;;  %1971 = vmatprep.mubr.bf16.mxu0 %v3267_v10  ;;  %v131_v13 = vld [vmem:[%s5738_s1 + $0x320] sm:$0xff]  ;;  %v3747_v15 = vcombine.low %v99_v8, %v115_v9  ;;  %5954 = vst [vmem:[#allocation20_spill] sm:$0xff] %v3824_v43  ;;  %v3836_v47 = vcombine.high %v100_v44, %v116_v45  ;;  %v132_v48 = vld [vmem:[%s5738_s1 + $0x328] sm:$0xff]  ;;  %v37_v7 = vld [vmem:[%s5738_s1 + $0x30] sm:$0xff] }
   0x9   :  { %v147_v14 = vld [vmem:[%s5738_s1 + $0x3a0] sm:$0xff]  ;;  %5955 = vst [vmem:[#allocation21_spill] sm:$0xff] %v3834_v46  ;;  %v148_v49 = vld [vmem:[%s5738_s1 + $0x3a8] sm:$0xff]  ;;  %v3846_v50 = vcombine.low %v100_v44, %v116_v45  ;;  %v53_v8 = vld [vmem:[%s5738_s1 + $0xb0] sm:$0xff] }
   0xa   :  { %5940 = vst [vmem:[#allocation6_spill] sm:$0xff] %v3737_v12  ;;  %5941 = vst [vmem:[#allocation7_spill] sm:$0xff] %v3747_v15  ;;  %v3749_v16 = vcombine.high %v131_v13, %v147_v14  ;;  %v163_v17 = vld [vmem:[%s5738_s1 + $0x420] sm:$0xff]  ;;  %v3759_v19 = vcombine.low %v131_v13, %v147_v14  ;;  %v3848_v51 = vcombine.high %v132_v48, %v148_v49  ;;  %v164_v52 = vld [vmem:[%s5738_s1 + $0x428] sm:$0xff] }
   0xb   :  { %v179_v18 = vld [vmem:[%s5738_s1 + $0x4a0] sm:$0xff]  ;;  %5956 = vst [vmem:[#allocation22_spill] sm:$0xff] %v3836_v47  ;;  %5957 = vst [vmem:[#allocation23_spill] sm:$0xff] %v3846_v50  ;;  %v180_v53 = vld [vmem:[%s5738_s1 + $0x4a8] sm:$0xff]  ;;  %v3858_v54 = vcombine.low %v132_v48, %v148_v49  ;;  %v3908_v10 = vcombine.high %v37_v7, %v53_v8 }
   0xc   :  { %5942 = vst [vmem:[#allocation8_spill] sm:$0xff] %v3749_v16  ;;  %5943 = vst [vmem:[#allocation9_spill] sm:$0xff] %v3759_v19  ;;  %v3761_v20 = vcombine.high %v163_v17, %v179_v18  ;;  %v195_v21 = vld [vmem:[%s5738_s1 + $0x520] sm:$0xff]  ;;  %v3771_v23 = vcombine.low %v163_v17, %v179_v18  ;;  %v3860_v55 = vcombine.high %v164_v52, %v180_v53  ;;  %v196_v56 = vld [vmem:[%s5738_s1 + $0x528] sm:$0xff] }
   0xd   :  { %v211_v22 = vld [vmem:[%s5738_s1 + $0x5a0] sm:$0xff]  ;;  %5958 = vst [vmem:[#allocation24_spill] sm:$0xff] %v3848_v51  ;;  %5959 = vst [vmem:[#allocation25_spill] sm:$0xff] %v3858_v54  ;;  %v212_v57 = vld [vmem:[%s5738_s1 + $0x5a8] sm:$0xff]  ;;  %v3870_v58 = vcombine.low %v164_v52, %v180_v53  ;;  %v3268_v18 = vcombine.low %v20_v37, %v20_v37 }
   0xe   :  { %1942 = vmatpush1.bf16.xpose.msra.mxu0 %v3735_v11  ;;  %5944 = vst [vmem:[#allocation10_spill] sm:$0xff] %v3761_v20  ;;  %5945 = vst [vmem:[#allocation11_spill] sm:$0xff] %v3771_v23  ;;  %v3773_v24 = vcombine.high %v195_v21, %v211_v22  ;;  %v227_v25 = vld [vmem:[%s5738_s1 + $0x620] sm:$0xff]  ;;  %v3783_v27 = vcombine.low %v195_v21, %v211_v22  ;;  %v3872_v59 = vcombine.high %v196_v56, %v212_v57  ;;  %v228_v60 = vld [vmem:[%s5738_s1 + $0x628] sm:$0xff] }
   0xf   :  { %1943 = vmatprep.subr.bf16.mxu0 %v3737_v12  ;;  %v243_v26 = vld [vmem:[%s5738_s1 + $0x6a0] sm:$0xff]  ;;  %5960 = vst [vmem:[#allocation26_spill] sm:$0xff] %v3860_v55  ;;  %5961 = vst [vmem:[#allocation27_spill] sm:$0xff] %v3870_v58  ;;  %v244_v61 = vld [vmem:[%s5738_s1 + $0x6a8] sm:$0xff]  ;;  %v3882_v62 = vcombine.low %v196_v56, %v212_v57  ;;  %v3923_v21 = vcombine.low %v37_v7, %v53_v8 }
  0x10   :  { %5946 = vst [vmem:[#allocation12_spill] sm:$0xff] %v3773_v24  ;;  %5947 = vst [vmem:[#allocation13_spill] sm:$0xff] %v3783_v27  ;;  %v3785_v28 = vcombine.high %v227_v25, %v243_v26  ;;  %v259_v29 = vld [vmem:[%s5738_s1 + $0x720] sm:$0xff]  ;;  %v3795_v31 = vcombine.low %v227_v25, %v243_v26  ;;  %v3884_v63 = vcombine.high %v228_v60, %v244_v61  ;;  %v260_v0 = vld [vmem:[%s5738_s1 + $0x728] sm:$0xff] }
  0x11   :  { %v275_v30 = vld [vmem:[%s5738_s1 + $0x7a0] sm:$0xff]  ;;  %5962 = vst [vmem:[#allocation28_spill] sm:$0xff] %v3872_v59  ;;  %5963 = vst [vmem:[#allocation29_spill] sm:$0xff] %v3882_v62  ;;  %v276_v1 = vld [vmem:[%s5738_s1 + $0x7a8] sm:$0xff]  ;;  %v3894_v2 = vcombine.low %v228_v60, %v244_v61 }
  0x12   :  { %5948 = vst [vmem:[#allocation14_spill] sm:$0xff] %v3785_v28  ;;  %5949 = vst [vmem:[#allocation15_spill] sm:$0xff] %v3795_v31  ;;  %v3797_v32 = vcombine.high %v259_v29, %v275_v30  ;;  %v3807_v35 = vcombine.low %v259_v29, %v275_v30  ;;  %v3896_v5 = vcombine.high %v260_v0, %v276_v1  ;;  %v3915_v13 = vld [vmem:[%s5739_s0 + $0x30] sm:$0xff] }
  0x13   :  { %5964 = vst [vmem:[#allocation30_spill] sm:$0xff] %v3884_v63  ;;  %5965 = vst [vmem:[#allocation31_spill] sm:$0xff] %v3894_v2  ;;  %v3906_v9 = vcombine.low %v260_v0, %v276_v1  ;;  %v69_v14 = vld [vmem:[%s5738_s1 + $0x130] sm:$0xff]  ;;  %v3271_v22 = vcombine.high %v3915_v13, %v3915_v13 }
  0x14   :  { %5950 = vst [vmem:[#allocation16_spill] sm:$0xff] %v3797_v32  ;;  %5951 = vst [vmem:[#allocation17_spill] sm:$0xff] %v3807_v35  ;;  %v85_v17 = vld [vmem:[%s5738_s1 + $0x1b0] sm:$0xff] }
  0x15   :  { %5966 = vst [vmem:[#allocation32_spill] sm:$0xff] %v3896_v5  ;;  %5967 = vst [vmem:[#allocation33_spill] sm:$0xff] %v3906_v9  ;;  %v3927_v25 = vcombine.high %v69_v14, %v85_v17  ;;  %v101_v26 = vld [vmem:[%s5738_s1 + $0x230] sm:$0xff]  ;;  %v3937_v30 = vcombine.low %v69_v14, %v85_v17  ;;  %v38_v14 = vld [vmem:[%s5738_s1 + $0x38] sm:$0xff] }
  0x16   :  { %1944 = vmatpush1.bf16.xpose.msra.mxu0 %v3747_v15  ;;  %5968 = vst [vmem:[#allocation34_spill] sm:$0xff] %v3908_v10  ;;  %5969 = vst [vmem:[#allocation35_spill] sm:$0xff] %v3923_v21  ;;  %v117_v29 = vld [vmem:[%s5738_s1 + $0x2b0] sm:$0xff]  ;;  %v54_v17 = vld [vmem:[%s5738_s1 + $0xb8] sm:$0xff] }
  0x17   :  { %1945 = vmatprep.subr.bf16.mxu0 %v3749_v16  ;;  %5970 = vst [vmem:[#allocation36_spill] sm:$0xff] %v3927_v25  ;;  %5971 = vst [vmem:[#allocation37_spill] sm:$0xff] %v3937_v30  ;;  %v3939_v33 = vcombine.high %v101_v26, %v117_v29  ;;  %v149_v37 = vld [vmem:[%s5738_s1 + $0x3b0] sm:$0xff]  ;;  %v3949_v38 = vcombine.low %v101_v26, %v117_v29  ;;  %v31_v26 = vld [vmem:[%s5738_s1] sm:$0xff] }
  0x18   :  { %v3951_v39 = vcombine.high %v133_v34, %v149_v37  ;;  %v3961_v44 = vcombine.low %v133_v34, %v149_v37  ;;  %v197_v48 = vld [vmem:[%s5738_s1 + $0x530] sm:$0xff]  ;;  %v47_v29 = vld [vmem:[%s5738_s1 + $0x80] sm:$0xff]  ;;  %v4024_v34 = vld [vmem:[%s5739_s0 + $0x38] sm:$0xff] }
  0x19   :  { %5972 = vst [vmem:[#allocation38_spill] sm:$0xff] %v3939_v33  ;;  %5973 = vst [vmem:[#allocation39_spill] sm:$0xff] %v3949_v38  ;;  %v213_v49 = vld [vmem:[%s5738_s1 + $0x5b0] sm:$0xff]  ;;  %v4026_v37 = vcombine.high %v31_v26, %v47_v29 }
  0x1a   :  { %5974 = vst [vmem:[#allocation40_spill] sm:$0xff] %v3951_v39  ;;  %5975 = vst [vmem:[#allocation41_spill] sm:$0xff] %v3961_v44  ;;  %v3975_v53 = vcombine.high %v197_v48, %v213_v49  ;;  %v229_v56 = vld [vmem:[%s5738_s1 + $0x630] sm:$0xff]  ;;  %v3985_v60 = vcombine.low %v197_v48, %v213_v49  ;;  %v86_v48 = vld [vmem:[%s5738_s1 + $0x1b8] sm:$0xff]  ;;  %v3270_v49 = vcombine.low %v3915_v13, %v3915_v13 }
  0x1b   :  { %v245_v57 = vld [vmem:[%s5738_s1 + $0x6b0] sm:$0xff]  ;;  %1779 = vmatprep.subr.bf16.mxu1 %v4026_v37  ;;  %v79_v13 = vld [vmem:[%s5738_s1 + $0x180] sm:$0xff] }
  0x1c   :  { %5978 = vst [vmem:[#allocation44_spill] sm:$0xff] %v3975_v53  ;;  %5979 = vst [vmem:[#allocation45_spill] sm:$0xff] %v3985_v60  ;;  %v3987_v61 = vcombine.high %v229_v56, %v245_v57  ;;  %v261_v0 = vld [vmem:[%s5738_s1 + $0x730] sm:$0xff]  ;;  %v3997_v7 = vcombine.low %v229_v56, %v245_v57  ;;  %v4039_v56 = vcombine.low %v38_v14, %v54_v17 }
  0x1d   :  { %v277_v1 = vld [vmem:[%s5738_s1 + $0x7b0] sm:$0xff]  ;;  %v3273_v57 = vcombine.high %v4024_v34, %v4024_v34 }
  0x1e   :  { %1946 = vmatpush1.bf16.xpose.msra.mxu0 %v3759_v19  ;;  %5980 = vst [vmem:[#allocation46_spill] sm:$0xff] %v3987_v61  ;;  %5981 = vst [vmem:[#allocation47_spill] sm:$0xff] %v3997_v7  ;;  %v3999_v8 = vcombine.high %v261_v0, %v277_v1  ;;  %v73_v4 = vld [vmem:[%s5738_s1 + $0x150] sm:$0xff] }
  0x1f   :  { %1947 = vmatprep.subr.bf16.mxu0 %v3761_v20  ;;  %5985 = vst [vmem:[#allocation51_spill] sm:$0xff] %v4039_v56  ;;  %v89_v3 = vld [vmem:[%s5738_s1 + $0x1d0] sm:$0xff] }
  0x20   :  { %5982 = vst [vmem:[#allocation48_spill] sm:$0xff] %v3999_v8 }
  0x26   :  { %1948 = vmatpush1.bf16.xpose.msra.mxu0 %v3771_v23 }
  0x27   :  { %1949 = vmatprep.subr.bf16.mxu0 %v3773_v24 }
  0x2e   :  { %1950 = vmatpush1.bf16.xpose.msra.mxu0 %v3783_v27 }
  0x2f   :  { %1951 = vmatprep.subr.bf16.mxu0 %v3785_v28 }
  0x36   :  { %1952 = vmatpush1.bf16.xpose.msra.mxu0 %v3795_v31 }
  0x37   :  { %1953 = vmatprep.subr.bf16.mxu0 %v3797_v32 }
  0x3e   :  { %1954 = vmatpush1.bf16.xpose.msra.mxu0 %v3807_v35 }
  0x3f   :  { %1979 = vmatprep.subr.bf16.mxu0 %v3809_v36  ;;  %v88_v36 = vld [vmem:[%s5738_s1 + $0x1c8] sm:$0xff] }
  0x45   :  { %1972 = vmatmul.mubr.bf16.vlgmr.msra.gmra.mrb[0].mxu0 %v3266_v40  ;;  %v165_v40 = vld [vmem:[%s5738_s1 + $0x430] sm:$0xff] }
  0x46   :  { %1980 = vmatpush1.bf16.xpose.msra.mxu0 %v3822_v41  ;;  %2011 = vmatprep.mubr.bf16.mxu0 %v3269_v42  ;;  %v181_v42 = vld [vmem:[%s5738_s1 + $0x4b0] sm:$0xff] }
  0x47   :  { %1981 = vmatprep.subr.bf16.mxu0 %v3824_v43  ;;  %v3963_v45 = vcombine.high %v165_v40, %v181_v42  ;;  %v3973_v52 = vcombine.low %v165_v40, %v181_v42  ;;  %v4028_v40 = vcombine.low %v31_v26, %v47_v29  ;;  %v70_v42 = vld [vmem:[%s5738_s1 + $0x138] sm:$0xff] }
  0x48   :  { %v102_v26 = vld [vmem:[%s5738_s1 + $0x238] sm:$0xff] }
  0x49   :  { %5976 = vst [vmem:[#allocation42_spill] sm:$0xff] %v3963_v45  ;;  %5977 = vst [vmem:[#allocation43_spill] sm:$0xff] %v3973_v52  ;;  %1780 = vmatpush1.bf16.xpose.msra.mxu1 %v4028_v40  ;;  %v118_v29 = vld [vmem:[%s5738_s1 + $0x2b8] sm:$0xff] }
  0x4e   :  { %1982 = vmatpush1.bf16.xpose.msra.mxu0 %v3834_v46 }
  0x4f   :  { %1983 = vmatprep.subr.bf16.mxu0 %v3836_v47 }
  0x56   :  { %1984 = vmatpush1.bf16.xpose.msra.mxu0 %v3846_v50  ;;  %v272_v50 = vld [vmem:[%s5738_s1 + $0x788] sm:$0xff] }
  0x57   :  { %1985 = vmatprep.subr.bf16.mxu0 %v3848_v51 }
  0x5e   :  { %1986 = vmatpush1.bf16.xpose.msra.mxu0 %v3858_v54 }
  0x5f   :  { %1987 = vmatprep.subr.bf16.mxu0 %v3860_v55 }
  0x66   :  { %1988 = vmatpush1.bf16.xpose.msra.mxu0 %v3870_v58 }
  0x67   :  { %1989 = vmatprep.subr.bf16.mxu0 %v3872_v59 }
  0x6e   :  { %1990 = vmatpush1.bf16.xpose.msra.mxu0 %v3882_v62 }
  0x6f   :  { %1991 = vmatprep.subr.bf16.mxu0 %v3884_v63 }
  0x76   :  { %1992 = vmatpush1.bf16.xpose.msra.mxu0 %v3894_v2 }
  0x77   :  { %1993 = vmatprep.subr.bf16.mxu0 %v3896_v5 }
  0x7e   :  { %1994 = vmatpush1.bf16.xpose.msra.mxu0 %v3906_v9 }
  0x7f   :  { %2019 = vmatprep.subr.bf16.mxu0 %v3908_v10 }
  0x85   :  { %2012 = vmatmul.mubr.bf16.vlgmr.msra.gmra.mrb[0].mxu0 %v3268_v18  ;;  %v4009_v18 = vcombine.low %v261_v0, %v277_v1  ;;  %v4044_v0 = vcombine.high %v70_v42, %v86_v48  ;;  %v63_v1 = vld [vmem:[%s5738_s1 + $0x100] sm:$0xff] }
  0x86   :  { %2020 = vmatpush1.bf16.xpose.msra.mxu0 %v3923_v21  ;;  %2051 = vmatprep.mubr.bf16.mxu0 %v3271_v22  ;;  %v4011_v22 = vcombine.high %v38_v14, %v54_v17  ;;  %v4054_v14 = vcombine.high %v63_v1, %v79_v13  ;;  %v4056_v17 = vcombine.low %v63_v1, %v79_v13  ;;  %v95_v1 = vld [vmem:[%s5738_s1 + $0x200] sm:$0xff] }
  0x87   :  { %2021 = vmatprep.subr.bf16.mxu0 %v3927_v25  ;;  %5983 = vst [vmem:[#allocation49_spill] sm:$0xff] %v4009_v18  ;;  %5986 = vst [vmem:[#allocation52_spill] sm:$0xff] %v4044_v0  ;;  %v111_v13 = vld [vmem:[%s5738_s1 + $0x280] sm:$0xff]  ;;  %v3272_v25 = vcombine.low %v4024_v34, %v4024_v34 }
  0x88   :  { %5984 = vst [vmem:[#allocation50_spill] sm:$0xff] %v4011_v22  ;;  %1781 = vmatprep.subr.bf16.mxu1 %v4054_v14 }
  0x89   :  { %1782 = vmatpush1.bf16.xpose.msra.mxu1 %v4056_v17 }
  0x8e   :  { %2022 = vmatpush1.bf16.xpose.msra.mxu0 %v3937_v30 }
  0x8f   :  { %2023 = vmatprep.subr.bf16.mxu0 %v3939_v33  ;;  %v87_v33 = vld [vmem:[%s5738_s1 + $0x1c0] sm:$0xff] }
  0x96   :  { %2024 = vmatpush1.bf16.xpose.msra.mxu0 %v3949_v38  ;;  %v71_v38 = vld [vmem:[%s5738_s1 + $0x140] sm:$0xff] }
  0x97   :  { %2025 = vmatprep.subr.bf16.mxu0 %v3951_v39  ;;  %v4253_v9 = vcombine.high %v71_v38, %v87_v33 }
  0x99   :  { %6002 = vst [vmem:[#allocation68_spill] sm:$0xff] %v4253_v9 }
  0x9e   :  { %2026 = vmatpush1.bf16.xpose.msra.mxu0 %v3961_v44 }
  0x9f   :  { %2027 = vmatprep.subr.bf16.mxu0 %v3963_v45 }
  0xa6   :  { %2028 = vmatpush1.bf16.xpose.msra.mxu0 %v3973_v52 }
  0xa7   :  { %2029 = vmatprep.subr.bf16.mxu0 %v3975_v53 }
  0xae   :  { %2030 = vmatpush1.bf16.xpose.msra.mxu0 %v3985_v60 }
  0xaf   :  { %2031 = vmatprep.subr.bf16.mxu0 %v3987_v61 }
  0xb6   :  { %2032 = vmatpush1.bf16.xpose.msra.mxu0 %v3997_v7 }
  0xb7   :  { %2033 = vmatprep.subr.bf16.mxu0 %v3999_v8 }
  0xbe   :  { %2034 = vmatpush1.bf16.xpose.msra.mxu0 %v4009_v18 }
  0xbf   :  { %2059 = vmatprep.subr.bf16.mxu0 %v4011_v22 }
  0xc5   :  { %2052 = vmatmul.mubr.bf16.vlgmr.msra.gmra.mrb[0].mxu0 %v3270_v49  ;;  %v4065_v49 = vcombine.low %v70_v42, %v86_v48  ;;  %v4080_v42 = vcombine.low %v95_v1, %v111_v13  ;;  %v134_v48 = vld [vmem:[%s5738_s1 + $0x338] sm:$0xff] }
  0xc6   :  { %2060 = vmatpush1.bf16.xpose.msra.mxu0 %v4039_v56  ;;  %2091 = vmatprep.mubr.bf16.mxu0 %v3273_v57  ;;  %v4068_v57 = vcombine.high %v102_v26, %v118_v29  ;;  %v4089_v56 = vcombine.low %v102_v26, %v118_v29  ;;  %v166_v29 = vld [vmem:[%s5738_s1 + $0x438] sm:$0xff] }
  0xc7   :  { %2061 = vmatprep.subr.bf16.mxu0 %v4044_v0  ;;  %5987 = vst [vmem:[#allocation53_spill] sm:$0xff] %v4065_v49  ;;  %v4078_v0 = vcombine.high %v95_v1, %v111_v13  ;;  %v127_v1 = vld [vmem:[%s5738_s1 + $0x300] sm:$0xff] }
  0xc8   :  { %5988 = vst [vmem:[#allocation54_spill] sm:$0xff] %v4068_v57  ;;  %5989 = vst [vmem:[#allocation55_spill] sm:$0xff] %v4089_v56  ;;  %v143_v13 = vld [vmem:[%s5738_s1 + $0x380] sm:$0xff] }
  0xc9   :  { %1783 = vmatprep.subr.bf16.mxu1 %v4078_v0  ;;  %v4104_v26 = vcombine.low %v127_v1, %v143_v13 }
  0xca   :  { %1784 = vmatpush1.bf16.xpose.msra.mxu1 %v4080_v42 }
  0xce   :  { %2062 = vmatpush1.bf16.xpose.msra.mxu0 %v4065_v49  ;;  %v150_v49 = vld [vmem:[%s5738_s1 + $0x3b8] sm:$0xff] }
  0xcf   :  { %2063 = vmatprep.subr.bf16.mxu0 %v4068_v57  ;;  %v4092_v22 = vcombine.high %v134_v48, %v150_v49  ;;  %v4102_v57 = vcombine.high %v127_v1, %v143_v13  ;;  %v4113_v18 = vcombine.low %v134_v48, %v150_v49  ;;  %v159_v1 = vld [vmem:[%s5738_s1 + $0x400] sm:$0xff]  ;;  %v198_v48 = vld [vmem:[%s5738_s1 + $0x538] sm:$0xff] }
  0xd0   :  { %v175_v13 = vld [vmem:[%s5738_s1 + $0x480] sm:$0xff] }
  0xd1   :  { %5990 = vst [vmem:[#allocation56_spill] sm:$0xff] %v4092_v22  ;;  %1785 = vmatprep.subr.bf16.mxu1 %v4102_v57  ;;  %5991 = vst [vmem:[#allocation57_spill] sm:$0xff] %v4113_v18  ;;  %v4128_v49 = vcombine.low %v159_v1, %v175_v13 }
  0xd2   :  { %1786 = vmatpush1.bf16.xpose.msra.mxu1 %v4104_v26 }
  0xd6   :  { %2064 = vmatpush1.bf16.xpose.msra.mxu0 %v4089_v56  ;;  %v182_v56 = vld [vmem:[%s5738_s1 + $0x4b8] sm:$0xff] }
  0xd7   :  { %2065 = vmatprep.subr.bf16.mxu0 %v4092_v22  ;;  %v4116_v8 = vcombine.high %v166_v29, %v182_v56  ;;  %v4126_v22 = vcombine.high %v159_v1, %v175_v13  ;;  %v4137_v7 = vcombine.low %v166_v29, %v182_v56  ;;  %v191_v1 = vld [vmem:[%s5738_s1 + $0x500] sm:$0xff]  ;;  %v230_v29 = vld [vmem:[%s5738_s1 + $0x638] sm:$0xff] }
  0xd8   :  { %v207_v13 = vld [vmem:[%s5738_s1 + $0x580] sm:$0xff] }
  0xd9   :  { %5992 = vst [vmem:[#allocation58_spill] sm:$0xff] %v4116_v8  ;;  %1787 = vmatprep.subr.bf16.mxu1 %v4126_v22  ;;  %5993 = vst [vmem:[#allocation59_spill] sm:$0xff] %v4137_v7  ;;  %v4152_v56 = vcombine.low %v191_v1, %v207_v13 }
  0xda   :  { %1788 = vmatpush1.bf16.xpose.msra.mxu1 %v4128_v49 }
  0xde   :  { %2066 = vmatpush1.bf16.xpose.msra.mxu0 %v4113_v18  ;;  %v214_v18 = vld [vmem:[%s5738_s1 + $0x5b8] sm:$0xff] }
  0xdf   :  { %2067 = vmatprep.subr.bf16.mxu0 %v4116_v8  ;;  %v4140_v61 = vcombine.high %v198_v48, %v214_v18  ;;  %v4150_v8 = vcombine.high %v191_v1, %v207_v13  ;;  %v4161_v60 = vcombine.low %v198_v48, %v214_v18  ;;  %v223_v1 = vld [vmem:[%s5738_s1 + $0x600] sm:$0xff]  ;;  %v262_v48 = vld [vmem:[%s5738_s1 + $0x738] sm:$0xff] }
  0xe0   :  { %v239_v13 = vld [vmem:[%s5738_s1 + $0x680] sm:$0xff] }
  0xe1   :  { %5994 = vst [vmem:[#allocation60_spill] sm:$0xff] %v4140_v61  ;;  %1789 = vmatprep.subr.bf16.mxu1 %v4150_v8  ;;  %5995 = vst [vmem:[#allocation61_spill] sm:$0xff] %v4161_v60  ;;  %v4176_v18 = vcombine.low %v223_v1, %v239_v13 }
  0xe2   :  { %1790 = vmatpush1.bf16.xpose.msra.mxu1 %v4152_v56 }
  0xe6   :  { %2068 = vmatpush1.bf16.xpose.msra.mxu0 %v4137_v7  ;;  %v246_v7 = vld [vmem:[%s5738_s1 + $0x6b8] sm:$0xff] }
  0xe7   :  { %2069 = vmatprep.subr.bf16.mxu0 %v4140_v61  ;;  %v4164_v53 = vcombine.high %v230_v29, %v246_v7  ;;  %v4174_v61 = vcombine.high %v223_v1, %v239_v13  ;;  %v4185_v52 = vcombine.low %v230_v29, %v246_v7  ;;  %v255_v1 = vld [vmem:[%s5738_s1 + $0x700] sm:$0xff] }
  0xe8   :  { %v271_v13 = vld [vmem:[%s5738_s1 + $0x780] sm:$0xff] }
  0xe9   :  { %5996 = vst [vmem:[#allocation62_spill] sm:$0xff] %v4164_v53  ;;  %1791 = vmatprep.subr.bf16.mxu1 %v4174_v61  ;;  %5997 = vst [vmem:[#allocation63_spill] sm:$0xff] %v4185_v52  ;;  %v4200_v7 = vcombine.low %v255_v1, %v271_v13  ;;  %v39_v29 = vld [vmem:[%s5738_s1 + $0x40] sm:$0xff] }
  0xea   :  { %1792 = vmatpush1.bf16.xpose.msra.mxu1 %v4176_v18 }
  0xee   :  { %2070 = vmatpush1.bf16.xpose.msra.mxu0 %v4161_v60  ;;  %v278_v60 = vld [vmem:[%s5738_s1 + $0x7b8] sm:$0xff] }
  0xef   :  { %2071 = vmatprep.subr.bf16.mxu0 %v4164_v53  ;;  %v4188_v45 = vcombine.high %v262_v48, %v278_v60  ;;  %v4198_v53 = vcombine.high %v255_v1, %v271_v13  ;;  %v4209_v44 = vcombine.low %v262_v48, %v278_v60  ;;  %v4218_v1 = vld [vmem:[%s5739_s0] sm:$0xff]  ;;  %v32_v13 = vld [vmem:[%s5738_s1 + $0x8] sm:$0xff] }
  0xf0   :  { %v48_v60 = vld [vmem:[%s5738_s1 + $0x88] sm:$0xff]  ;;  %v4230_v48 = vld [vmem:[%s5739_s0 + $0x40] sm:$0xff] }
  0xf1   :  { %5998 = vst [vmem:[#allocation64_spill] sm:$0xff] %v4188_v45  ;;  %1793 = vmatprep.subr.bf16.mxu1 %v4198_v53  ;;  %5999 = vst [vmem:[#allocation65_spill] sm:$0xff] %v4209_v44  ;;  %v4242_v30 = vcombine.high %v32_v13, %v48_v60  ;;  %v3275_v10 = vcombine.high %v4230_v48, %v4230_v48  ;;  %v3274_v32 = vcombine.low %v4230_v48, %v4230_v48  ;;  %v81_v48 = vld [vmem:[%s5738_s1 + $0x190] sm:$0xff] }
  0xf2   :  { %1794 = vmatpush1.bf16.xpose.msra.mxu1 %v4200_v7 }
  0xf3   :  { %1819 = vmatprep.subr.bf16.mxu1 %v4242_v30 }
  0xf6   :  { %2072 = vmatpush1.bf16.xpose.msra.mxu0 %v4185_v52  ;;  %v55_v52 = vld [vmem:[%s5738_s1 + $0xc0] sm:$0xff] }
  0xf7   :  { %2073 = vmatprep.subr.bf16.mxu0 %v4188_v45  ;;  %v4212_v39 = vcombine.high %v39_v29, %v55_v52  ;;  %v4234_v45 = vcombine.low %v32_v13, %v48_v60  ;;  %v4248_v21 = vcombine.low %v39_v29, %v55_v52  ;;  %v80_v52 = vld [vmem:[%s5738_s1 + $0x188] sm:$0xff]  ;;  %v4275_v13 = vcombine.low %v71_v38, %v87_v33  ;;  %v135_v38 = vld [vmem:[%s5738_s1 + $0x340] sm:$0xff] }
  0xf9   :  { %6000 = vst [vmem:[#allocation66_spill] sm:$0xff] %v4212_v39  ;;  %6001 = vst [vmem:[#allocation67_spill] sm:$0xff] %v4248_v21 }
  0xfa   :  { %6003 = vst [vmem:[#allocation69_spill] sm:$0xff] %v4275_v13 }
  0xfe   :  { %2074 = vmatpush1.bf16.xpose.msra.mxu0 %v4209_v44  ;;  %v3259_v44 = vcombine.high %v4218_v1, %v4218_v1 }
  0xff   :  { %2099 = vmatprep.subr.bf16.mxu0 %v4212_v39  ;;  %v3258_v39 = vcombine.low %v4218_v1, %v4218_v1 }
 0x100   :  { %1811 = vmatprep.mubr.bf16.mxu1 %v3259_v44  ;;  %v64_v44 = vld [vmem:[%s5738_s1 + $0x108] sm:$0xff] }
 0x101   :  { %1812 = vmatmul.mubr.bf16.vlgmr.msra.gmra.mrb[0].mxu1 %v3258_v39  ;;  %v4264_v29 = vcombine.low %v64_v44, %v80_v52  ;;  %v4266_v39 = vcombine.high %v64_v44, %v80_v52  ;;  %v96_v44 = vld [vmem:[%s5738_s1 + $0x208] sm:$0xff] }
 0x102   :  { %1820 = vmatpush1.bf16.xpose.msra.mxu1 %v4234_v45  ;;  %v112_v52 = vld [vmem:[%s5738_s1 + $0x288] sm:$0xff] }
 0x103   :  { %1821 = vmatprep.subr.bf16.mxu1 %v4266_v39  ;;  %v4290_v33 = vcombine.high %v96_v44, %v112_v52 }
 0x105   :  { %2092 = vmatmul.mubr.bf16.vlgmr.msra.gmra.mrb[0].mxu0 %v3272_v25  ;;  %v103_v25 = vld [vmem:[%s5738_s1 + $0x240] sm:$0xff] }
 0x106   :  { %2100 = vmatpush1.bf16.xpose.msra.mxu0 %v4248_v21  ;;  %2131 = vmatprep.mubr.bf16.mxu0 %v3275_v10  ;;  %v119_v10 = vld [vmem:[%s5738_s1 + $0x2c0] sm:$0xff] }
 0x107   :  { %2101 = vmatprep.subr.bf16.mxu0 %v4253_v9  ;;  %v4277_v60 = vcombine.high %v103_v25, %v119_v10  ;;  %v4288_v9 = vcombine.low %v96_v44, %v112_v52  ;;  %v4299_v21 = vcombine.low %v103_v25, %v119_v10  ;;  %v128_v44 = vld [vmem:[%s5738_s1 + $0x308] sm:$0xff]  ;;  %v167_v10 = vld [vmem:[%s5738_s1 + $0x440] sm:$0xff] }
 0x108   :  { %v144_v52 = vld [vmem:[%s5738_s1 + $0x388] sm:$0xff] }
 0x109   :  { %6004 = vst [vmem:[#allocation70_spill] sm:$0xff] %v4277_v60  ;;  %6005 = vst [vmem:[#allocation71_spill] sm:$0xff] %v4299_v21  ;;  %v4314_v25 = vcombine.high %v128_v44, %v144_v52 }
 0x10a   :  { %1822 = vmatpush1.bf16.xpose.msra.mxu1 %v4264_v29 }
 0x10b   :  { %1823 = vmatprep.subr.bf16.mxu1 %v4290_v33 }
 0x10e   :  { %2102 = vmatpush1.bf16.xpose.msra.mxu0 %v4275_v13  ;;  %v151_v13 = vld [vmem:[%s5738_s1 + $0x3c0] sm:$0xff] }
 0x10f   :  { %2103 = vmatprep.subr.bf16.mxu0 %v4277_v60  ;;  %v4301_v5 = vcombine.high %v135_v38, %v151_v13  ;;  %v4312_v60 = vcombine.low %v128_v44, %v144_v52  ;;  %v4323_v2 = vcombine.low %v135_v38, %v151_v13  ;;  %v160_v44 = vld [vmem:[%s5738_s1 + $0x408] sm:$0xff]  ;;  %v199_v38 = vld [vmem:[%s5738_s1 + $0x540] sm:$0xff] }
 0x110   :  { %v176_v52 = vld [vmem:[%s5738_s1 + $0x488] sm:$0xff] }
 0x111   :  { %6006 = vst [vmem:[#allocation72_spill] sm:$0xff] %v4301_v5  ;;  %6007 = vst [vmem:[#allocation73_spill] sm:$0xff] %v4323_v2  ;;  %v4338_v13 = vcombine.high %v160_v44, %v176_v52 }
 0x112   :  { %1824 = vmatpush1.bf16.xpose.msra.mxu1 %v4288_v9 }
 0x113   :  { %1825 = vmatprep.subr.bf16.mxu1 %v4314_v25 }
 0x116   :  { %2104 = vmatpush1.bf16.xpose.msra.mxu0 %v4299_v21  ;;  %v183_v21 = vld [vmem:[%s5738_s1 + $0x4c0] sm:$0xff] }
 0x117   :  { %2105 = vmatprep.subr.bf16.mxu0 %v4301_v5  ;;  %v4325_v63 = vcombine.high %v167_v10, %v183_v21  ;;  %v4336_v5 = vcombine.low %v160_v44, %v176_v52  ;;  %v4347_v62 = vcombine.low %v167_v10, %v183_v21  ;;  %v192_v44 = vld [vmem:[%s5738_s1 + $0x508] sm:$0xff]  ;;  %v231_v10 = vld [vmem:[%s5738_s1 + $0x640] sm:$0xff] }
 0x118   :  { %v208_v52 = vld [vmem:[%s5738_s1 + $0x588] sm:$0xff] }
 0x119   :  { %6008 = vst [vmem:[#allocation74_spill] sm:$0xff] %v4325_v63  ;;  %6009 = vst [vmem:[#allocation75_spill] sm:$0xff] %v4347_v62  ;;  %v4362_v21 = vcombine.high %v192_v44, %v208_v52 }
 0x11a   :  { %1826 = vmatpush1.bf16.xpose.msra.mxu1 %v4312_v60 }
 0x11b   :  { %1827 = vmatprep.subr.bf16.mxu1 %v4338_v13 }
 0x11e   :  { %2106 = vmatpush1.bf16.xpose.msra.mxu0 %v4323_v2  ;;  %v215_v2 = vld [vmem:[%s5738_s1 + $0x5c0] sm:$0xff] }
 0x11f   :  { %2107 = vmatprep.subr.bf16.mxu0 %v4325_v63  ;;  %v4349_v59 = vcombine.high %v199_v38, %v215_v2  ;;  %v4360_v63 = vcombine.low %v192_v44, %v208_v52  ;;  %v4371_v58 = vcombine.low %v199_v38, %v215_v2  ;;  %v224_v44 = vld [vmem:[%s5738_s1 + $0x608] sm:$0xff]  ;;  %v263_v38 = vld [vmem:[%s5738_s1 + $0x740] sm:$0xff] }
 0x120   :  { %v240_v52 = vld [vmem:[%s5738_s1 + $0x688] sm:$0xff] }
 0x121   :  { %6010 = vst [vmem:[#allocation76_spill] sm:$0xff] %v4349_v59  ;;  %6011 = vst [vmem:[#allocation77_spill] sm:$0xff] %v4371_v58  ;;  %v4386_v2 = vcombine.high %v224_v44, %v240_v52 }
 0x122   :  { %1828 = vmatpush1.bf16.xpose.msra.mxu1 %v4336_v5 }
 0x123   :  { %1829 = vmatprep.subr.bf16.mxu1 %v4362_v21 }
 0x126   :  { %2108 = vmatpush1.bf16.xpose.msra.mxu0 %v4347_v62  ;;  %v247_v62 = vld [vmem:[%s5738_s1 + $0x6c0] sm:$0xff] }
 0x127   :  { %2109 = vmatprep.subr.bf16.mxu0 %v4349_v59  ;;  %v4373_v55 = vcombine.high %v231_v10, %v247_v62  ;;  %v4384_v59 = vcombine.low %v224_v44, %v240_v52  ;;  %v4395_v54 = vcombine.low %v231_v10, %v247_v62  ;;  %v288_v44 = vunpack.c.l.bf16 %v4218_v1 }
 0x128   :  { %v289_v52 = vunpack.c.h.bf16 %v4218_v1  ;;  %v56_v1 = vld [vmem:[%s5738_s1 + $0xc8] sm:$0xff] }
 0x129   :  { %6012 = vst [vmem:[#allocation78_spill] sm:$0xff] %v4373_v55  ;;  %6013 = vst [vmem:[#allocation79_spill] sm:$0xff] %v4395_v54  ;;  %v320_v46 = vmul.f32 %v288_v44, %v288_v44 }
 0x12a   :  { %1830 = vmatpush1.bf16.xpose.msra.mxu1 %v4360_v63  ;;  %v321_v43 = vmul.f32 %v289_v52, %v289_v52 }
 0x12b   :  { %1831 = vmatprep.subr.bf16.mxu1 %v4386_v2 }
 0x12e   :  { %2110 = vmatpush1.bf16.xpose.msra.mxu0 %v4371_v58  ;;  %v279_v58 = vld [vmem:[%s5738_s1 + $0x7c0] sm:$0xff] }
 0x12f   :  { %2111 = vmatprep.subr.bf16.mxu0 %v4373_v55  ;;  %v4397_v51 = vcombine.high %v263_v38, %v279_v58  ;;  %v256_v55 = vld [vmem:[%s5738_s1 + $0x708] sm:$0xff]  ;;  %v4421_v47 = vcombine.low %v263_v38, %v279_v58  ;;  %v49_v58 = vld [vmem:[%s5738_s1 + $0x90] sm:$0xff] }
 0x130   :  { %v4410_v62 = vcombine.low %v256_v55, %v272_v50  ;;  %v4412_v10 = vcombine.high %v256_v55, %v272_v50  ;;  %v352_v50 = vadd.f32 %v321_v43, %v320_v46  ;;  %v16_v55 = vld [vmem:[%s5739_s0 + $0x8] sm:$0xff] }
 0x131   :  { %6014 = vst [vmem:[#allocation80_spill] sm:$0xff] %v4397_v51  ;;  %6015 = vst [vmem:[#allocation81_spill] sm:$0xff] %v4421_v47  ;;  %v4440_v38 = vld [vmem:[%s5739_s0 + $0x48] sm:$0xff]  ;;  %v290_v43 = vunpack.c.l.bf16 %v16_v55  ;;  %v291_v46 = vunpack.c.h.bf16 %v16_v55  ;;  %v3261_v44 = vcombine.high %v16_v55, %v16_v55 }
 0x132   :  { %1832 = vmatpush1.bf16.xpose.msra.mxu1 %v4384_v59  ;;  %v3277_v24 = vcombine.high %v4440_v38, %v4440_v38 }
 0x133   :  { %1833 = vmatprep.subr.bf16.mxu1 %v4412_v10  ;;  %v322_v31 = vmul.f32 %v290_v43, %v290_v43  ;;  %v323_v28 = vmul.f32 %v291_v46, %v291_v46  ;;  %1851 = vmatprep.mubr.bf16.mxu1 %v3261_v44  ;;  %v129_v44 = vld [vmem:[%s5738_s1 + $0x310] sm:$0xff] }
 0x135   :  { %v353_v20 = vadd.f32 %v352_v50, %v322_v31  ;;  %v113_v50 = vld [vmem:[%s5738_s1 + $0x290] sm:$0xff] }
 0x136   :  { %2112 = vmatpush1.bf16.xpose.msra.mxu0 %v4395_v54  ;;  %v40_v54 = vld [vmem:[%s5738_s1 + $0x48] sm:$0xff] }
 0x137   :  { %2113 = vmatprep.subr.bf16.mxu0 %v4397_v51  ;;  %v4423_v41 = vcombine.high %v40_v54, %v56_v1  ;;  %v33_v51 = vld [vmem:[%s5738_s1 + $0x10] sm:$0xff]  ;;  %v4454_v27 = vcombine.low %v40_v54, %v56_v1 }
 0x138   :  { %v4442_v52 = vcombine.low %v33_v51, %v49_v58  ;;  %v4450_v35 = vcombine.high %v33_v51, %v49_v58  ;;  %v4462_v51 = vadd.f32 %v353_v20, %v323_v28  ;;  %v65_v54 = vld [vmem:[%s5738_s1 + $0x110] sm:$0xff]  ;;  %v104_v20 = vld [vmem:[%s5738_s1 + $0x248] sm:$0xff] }
 0x139   :  { %6016 = vst [vmem:[#allocation82_spill] sm:$0xff] %v4423_v41  ;;  %6017 = vst [vmem:[#allocation83_spill] sm:$0xff] %v4454_v27  ;;  %v4474_v31 = vcombine.high %v65_v54, %v81_v48  ;;  %v97_v1 = vld [vmem:[%s5738_s1 + $0x210] sm:$0xff]  ;;  %v152_v58 = vld [vmem:[%s5738_s1 + $0x3c8] sm:$0xff] }
 0x13a   :  { %1834 = vmatpush1.bf16.xpose.msra.mxu1 %v4410_v62 }
 0x13b   :  { %1859 = vmatprep.subr.bf16.mxu1 %v4450_v35 }
 0x13e   :  { %2114 = vmatpush1.bf16.xpose.msra.mxu0 %v4421_v47  ;;  %v72_v47 = vld [vmem:[%s5738_s1 + $0x148] sm:$0xff] }
 0x13f   :  { %2139 = vmatprep.subr.bf16.mxu0 %v4423_v41  ;;  %v3260_v41 = vcombine.low %v16_v55, %v16_v55  ;;  %v4459_v23 = vcombine.high %v72_v47, %v88_v36  ;;  %v4483_v28 = vcombine.low %v72_v47, %v88_v36  ;;  %v4496_v55 = vcombine.low %v97_v1, %v113_v50  ;;  %v136_v47 = vld [vmem:[%s5738_s1 + $0x348] sm:$0xff] }
 0x140   :  { %v4498_v36 = vcombine.high %v97_v1, %v113_v50  ;;  %v4509_v46 = vcombine.high %v136_v47, %v152_v58  ;;  %v184_v1 = vld [vmem:[%s5738_s1 + $0x4c8] sm:$0xff]  ;;  %v4531_v50 = vcombine.low %v136_v47, %v152_v58 }
 0x141   :  { %1852 = vmatmul.mubr.bf16.vlgmr.msra.gmra.mrb[0].mxu1 %v3260_v41  ;;  %6018 = vst [vmem:[#allocation84_spill] sm:$0xff] %v4459_v23  ;;  %v4472_v41 = vcombine.low %v65_v54, %v81_v48  ;;  %6019 = vst [vmem:[#allocation85_spill] sm:$0xff] %v4483_v28  ;;  %v145_v54 = vld [vmem:[%s5738_s1 + $0x390] sm:$0xff]  ;;  %v200_v58 = vld [vmem:[%s5738_s1 + $0x548] sm:$0xff] }
 0x142   :  { %1860 = vmatpush1.bf16.xpose.msra.mxu1 %v4442_v52  ;;  %6022 = vst [vmem:[#allocation88_spill] sm:$0xff] %v4509_v46  ;;  %v4520_v48 = vcombine.low %v129_v44, %v145_v54  ;;  %6023 = vst [vmem:[#allocation89_spill] sm:$0xff] %v4531_v50 }
 0x143   :  { %1861 = vmatprep.subr.bf16.mxu1 %v4474_v31 }
 0x145   :  { %2132 = vmatmul.mubr.bf16.vlgmr.msra.gmra.mrb[0].mxu0 %v3274_v32 }
 0x146   :  { %2140 = vmatpush1.bf16.xpose.msra.mxu0 %v4454_v27  ;;  %2171 = vmatprep.mubr.bf16.mxu0 %v3277_v24  ;;  %v120_v24 = vld [vmem:[%s5738_s1 + $0x2c8] sm:$0xff] }
 0x147   :  { %2141 = vmatprep.subr.bf16.mxu0 %v4459_v23  ;;  %v4485_v32 = vcombine.high %v104_v20, %v120_v24  ;;  %v4507_v43 = vcombine.low %v104_v20, %v120_v24  ;;  %v4522_v20 = vcombine.high %v129_v44, %v145_v54  ;;  %v168_v24 = vld [vmem:[%s5738_s1 + $0x448] sm:$0xff]  ;;  %v161_v44 = vld [vmem:[%s5738_s1 + $0x410] sm:$0xff] }
 0x148   :  { %v177_v54 = vld [vmem:[%s5738_s1 + $0x490] sm:$0xff] }
 0x149   :  { %6020 = vst [vmem:[#allocation86_spill] sm:$0xff] %v4485_v32  ;;  %6021 = vst [vmem:[#allocation87_spill] sm:$0xff] %v4507_v43  ;;  %v4546_v47 = vcombine.high %v161_v44, %v177_v54 }
 0x14a   :  { %1862 = vmatpush1.bf16.xpose.msra.mxu1 %v4472_v41 }
 0x14b   :  { %1863 = vmatprep.subr.bf16.mxu1 %v4498_v36  ;;  %6026 = vst [vmem:[#allocation92_spill] sm:$0xff] %v4546_v47 }
 0x14e   :  { %2142 = vmatpush1.bf16.xpose.msra.mxu0 %v4483_v28 }
 0x14f   :  { %2143 = vmatprep.subr.bf16.mxu0 %v4485_v32  ;;  %v4555_v32 = vcombine.low %v168_v24, %v184_v1 }
 0x151   :  { %6027 = vst [vmem:[#allocation93_spill] sm:$0xff] %v4555_v32 }
 0x152   :  { %1864 = vmatpush1.bf16.xpose.msra.mxu1 %v4496_v55 }
 0x153   :  { %1865 = vmatprep.subr.bf16.mxu1 %v4522_v20 }
 0x156   :  { %2144 = vmatpush1.bf16.xpose.msra.mxu0 %v4507_v43  ;;  %v4533_v43 = vcombine.high %v168_v24, %v184_v1  ;;  %v232_v1 = vld [vmem:[%s5738_s1 + $0x648] sm:$0xff] }
 0x157   :  { %2145 = vmatprep.subr.bf16.mxu0 %v4509_v46  ;;  %v4544_v46 = vcombine.low %v161_v44, %v177_v54  ;;  %v193_v44 = vld [vmem:[%s5738_s1 + $0x510] sm:$0xff] }
 0x158   :  { %6024 = vst [vmem:[#allocation90_spill] sm:$0xff] %v4533_v43  ;;  %v209_v54 = vld [vmem:[%s5738_s1 + $0x590] sm:$0xff] }
 0x159   :  { %6025 = vst [vmem:[#allocation91_spill] sm:$0xff] %v4544_v46  ;;  %v4570_v24 = vcombine.high %v193_v44, %v209_v54 }
 0x15a   :  { %1866 = vmatpush1.bf16.xpose.msra.mxu1 %v4520_v48 }
 0x15b   :  { %1867 = vmatprep.subr.bf16.mxu1 %v4546_v47  ;;  %6030 = vst [vmem:[#allocation96_spill] sm:$0xff] %v4570_v24 }
 0x15e   :  { %2146 = vmatpush1.bf16.xpose.msra.mxu0 %v4531_v50  ;;  %v216_v50 = vld [vmem:[%s5738_s1 + $0x5c8] sm:$0xff] }
 0x15f   :  { %2147 = vmatprep.subr.bf16.mxu0 %v4533_v43  ;;  %v4557_v28 = vcombine.high %v200_v58, %v216_v50  ;;  %v4568_v43 = vcombine.low %v193_v44, %v209_v54  ;;  %v4579_v23 = vcombine.low %v200_v58, %v216_v50  ;;  %v225_v44 = vld [vmem:[%s5738_s1 + $0x610] sm:$0xff]  ;;  %v264_v58 = vld [vmem:[%s5738_s1 + $0x748] sm:$0xff] }
 0x160   :  { %v241_v54 = vld [vmem:[%s5738_s1 + $0x690] sm:$0xff] }
 0x161   :  { %6028 = vst [vmem:[#allocation94_spill] sm:$0xff] %v4557_v28  ;;  %6029 = vst [vmem:[#allocation95_spill] sm:$0xff] %v4568_v43  ;;  %v4594_v50 = vcombine.high %v225_v44, %v241_v54 }
 0x162   :  { %1868 = vmatpush1.bf16.xpose.msra.mxu1 %v4544_v46  ;;  %6031 = vst [vmem:[#allocation97_spill] sm:$0xff] %v4579_v23  ;;  %v4665_v46 = vcombine.high %v73_v4, %v89_v3 }
 0x163   :  { %1869 = vmatprep.subr.bf16.mxu1 %v4570_v24  ;;  %6034 = vst [vmem:[#allocation100_spill] sm:$0xff] %v4594_v50 }
 0x164   :  { %6044 = vst [vmem:[#allocation110_spill] sm:$0xff] %v4665_v46 }
 0x166   :  { %2148 = vmatpush1.bf16.xpose.msra.mxu0 %v4555_v32  ;;  %v248_v32 = vld [vmem:[%s5738_s1 + $0x6c8] sm:$0xff] }
 0x167   :  { %2149 = vmatprep.subr.bf16.mxu0 %v4557_v28  ;;  %v4581_v27 = vcombine.high %v232_v1, %v248_v32  ;;  %v4592_v28 = vcombine.low %v225_v44, %v241_v54  ;;  %v4603_v19 = vcombine.low %v232_v1, %v248_v32  ;;  %v257_v44 = vld [vmem:[%s5738_s1 + $0x710] sm:$0xff] }
 0x168   :  { %v273_v54 = vld [vmem:[%s5738_s1 + $0x790] sm:$0xff] }
 0x169   :  { %6032 = vst [vmem:[#allocation98_spill] sm:$0xff] %v4581_v27  ;;  %6033 = vst [vmem:[#allocation99_spill] sm:$0xff] %v4592_v28  ;;  %v4618_v32 = vcombine.high %v257_v44, %v273_v54  ;;  %v41_v1 = vld [vmem:[%s5738_s1 + $0x50] sm:$0xff] }
 0x16a   :  { %1870 = vmatpush1.bf16.xpose.msra.mxu1 %v4568_v43  ;;  %6035 = vst [vmem:[#allocation101_spill] sm:$0xff] %v4603_v19 }
 0x16b   :  { %1871 = vmatprep.subr.bf16.mxu1 %v4594_v50  ;;  %6038 = vst [vmem:[#allocation104_spill] sm:$0xff] %v4618_v32 }
 0x16e   :  { %2150 = vmatpush1.bf16.xpose.msra.mxu0 %v4579_v23  ;;  %v280_v23 = vld [vmem:[%s5738_s1 + $0x7c8] sm:$0xff] }
 0x16f   :  { %2151 = vmatprep.subr.bf16.mxu0 %v4581_v27  ;;  %v4605_v16 = vcombine.high %v264_v58, %v280_v23  ;;  %v4616_v27 = vcombine.low %v257_v44, %v273_v54  ;;  %v4627_v15 = vcombine.low %v264_v58, %v280_v23  ;;  %v17_v44 = vld [vmem:[%s5739_s0 + $0x10] sm:$0xff]  ;;  %v34_v54 = vld [vmem:[%s5738_s1 + $0x18] sm:$0xff] }
 0x170   :  { %v4646_v23 = vld [vmem:[%s5739_s0 + $0x50] sm:$0xff]  ;;  %v292_v58 = vunpack.c.l.bf16 %v17_v44  ;;  %v3263_v11 = vcombine.high %v17_v44, %v17_v44 }
 0x171   :  { %6036 = vst [vmem:[#allocation102_spill] sm:$0xff] %v4605_v16  ;;  %6037 = vst [vmem:[#allocation103_spill] sm:$0xff] %v4616_v27  ;;  %v3279_v24 = vcombine.high %v4646_v23, %v4646_v23 }
 0x172   :  { %1872 = vmatpush1.bf16.xpose.msra.mxu1 %v4592_v28  ;;  %6039 = vst [vmem:[#allocation105_spill] sm:$0xff] %v4627_v15  ;;  %v324_v28 = vmul.f32 %v292_v58, %v292_v58  ;;  %1891 = vmatprep.mubr.bf16.mxu1 %v3263_v11  ;;  %v66_v11 = vld [vmem:[%s5738_s1 + $0x118] sm:$0xff]  ;;  %v153_v58 = vld [vmem:[%s5738_s1 + $0x3d0] sm:$0xff] }
 0x173   :  { %1873 = vmatprep.subr.bf16.mxu1 %v4618_v32  ;;  %v3276_v32 = vcombine.low %v4440_v38, %v4440_v38 }
 0x176   :  { %2152 = vmatpush1.bf16.xpose.msra.mxu0 %v4603_v19  ;;  %v57_v19 = vld [vmem:[%s5738_s1 + $0xd0] sm:$0xff] }
 0x177   :  { %2153 = vmatprep.subr.bf16.mxu0 %v4605_v16  ;;  %v4629_v12 = vcombine.high %v41_v1, %v57_v19  ;;  %v50_v16 = vld [vmem:[%s5738_s1 + $0x98] sm:$0xff]  ;;  %v4660_v43 = vcombine.low %v41_v1, %v57_v19 }
 0x178   :  { %v4648_v6 = vcombine.low %v34_v54, %v50_v16  ;;  %v114_v1 = vld [vmem:[%s5738_s1 + $0x298] sm:$0xff] }
 0x179   :  { %6040 = vst [vmem:[#allocation106_spill] sm:$0xff] %v4629_v12  ;;  %6043 = vst [vmem:[#allocation109_spill] sm:$0xff] %v4660_v43 }
 0x17a   :  { %1874 = vmatpush1.bf16.xpose.msra.mxu1 %v4616_v27  ;;  %6041 = vst [vmem:[#allocation107_spill] sm:$0xff] %v4648_v6  ;;  %v4656_v27 = vcombine.high %v34_v54, %v50_v16  ;;  %v355_v16 = vadd.f32 %v4462_v51, %v324_v28  ;;  %v105_v51 = vld [vmem:[%s5738_s1 + $0x250] sm:$0xff] }
 0x17b   :  { %v121_v28 = vld [vmem:[%s5738_s1 + $0x2d0] sm:$0xff] }
 0x17c   :  { %6042 = vst [vmem:[#allocation108_spill] sm:$0xff] %v4656_v27  ;;  %1899 = vmatprep.subr.bf16.mxu1 %v4656_v27 }
 0x17e   :  { %2154 = vmatpush1.bf16.xpose.msra.mxu0 %v4627_v15  ;;  %v293_v15 = vunpack.c.h.bf16 %v17_v44 }
 0x17f   :  { %2179 = vmatprep.subr.bf16.mxu0 %v4629_v12  ;;  %v3262_v12 = vcombine.low %v17_v44, %v17_v44 }
 0x180   :  { %v325_v50 = vmul.f32 %v293_v15, %v293_v15 }
 0x181   :  { %1892 = vmatmul.mubr.bf16.vlgmr.msra.gmra.mrb[0].mxu1 %v3262_v12  ;;  %v82_v12 = vld [vmem:[%s5738_s1 + $0x198] sm:$0xff] }
 0x182   :  { %1900 = vmatpush1.bf16.xpose.msra.mxu1 %v4648_v6  ;;  %v4669_v44 = vadd.f32 %v355_v16, %v325_v50  ;;  %v4679_v15 = vcombine.low %v66_v11, %v82_v12  ;;  %v4681_v19 = vcombine.high %v66_v11, %v82_v12  ;;  %v4692_v50 = vcombine.high %v105_v51, %v121_v28  ;;  %v130_v12 = vld [vmem:[%s5738_s1 + $0x318] sm:$0xff]  ;;  %v3681_v6 = vld [vmem:[%s5739_s0 + $0x28] sm:$0xff] }
 0x183   :  { %v4714_v16 = vcombine.low %v105_v51, %v121_v28  ;;  %v169_v28 = vld [vmem:[%s5738_s1 + $0x450] sm:$0xff]  ;;  %v298_v27 = vunpack.c.l.bf16 %v3681_v6 }
 0x184   :  { %6045 = vst [vmem:[#allocation111_spill] sm:$0xff] %v4679_v15  ;;  %6046 = vst [vmem:[#allocation112_spill] sm:$0xff] %v4681_v19  ;;  %1901 = vmatprep.subr.bf16.mxu1 %v4681_v19 }
 0x185   :  { %2172 = vmatmul.mubr.bf16.vlgmr.msra.gmra.mrb[0].mxu0 %v3276_v32  ;;  %6048 = vst [vmem:[#allocation114_spill] sm:$0xff] %v4692_v50  ;;  %v98_v32 = vld [vmem:[%s5738_s1 + $0x218] sm:$0xff]  ;;  %6051 = vst [vmem:[#allocation117_spill] sm:$0xff] %v4714_v16 }
 0x186   :  { %2180 = vmatpush1.bf16.xpose.msra.mxu0 %v4660_v43  ;;  %2211 = vmatprep.mubr.bf16.mxu0 %v3279_v24  ;;  %v4690_v24 = vcombine.low %v73_v4, %v89_v3  ;;  %v4703_v54 = vcombine.low %v98_v32, %v114_v1  ;;  %v4705_v3 = vcombine.high %v98_v32, %v114_v1  ;;  %v137_v4 = vld [vmem:[%s5738_s1 + $0x350] sm:$0xff]  ;;  %v146_v32 = vld [vmem:[%s5738_s1 + $0x398] sm:$0xff] }
 0x187   :  { %2181 = vmatprep.subr.bf16.mxu0 %v4665_v46  ;;  %v4716_v11 = vcombine.high %v137_v4, %v153_v58  ;;  %v4727_v1 = vcombine.low %v130_v12, %v146_v32  ;;  %v4729_v51 = vcombine.high %v130_v12, %v146_v32  ;;  %v162_v12 = vld [vmem:[%s5738_s1 + $0x418] sm:$0xff] }
 0x188   :  { %6047 = vst [vmem:[#allocation113_spill] sm:$0xff] %v4690_v24  ;;  %6049 = vst [vmem:[#allocation115_spill] sm:$0xff] %v4703_v54  ;;  %v178_v32 = vld [vmem:[%s5738_s1 + $0x498] sm:$0xff] }
 0x189   :  { %6050 = vst [vmem:[#allocation116_spill] sm:$0xff] %v4705_v3  ;;  %6052 = vst [vmem:[#allocation118_spill] sm:$0xff] %v4716_v11 }
 0x18a   :  { %1902 = vmatpush1.bf16.xpose.msra.mxu1 %v4679_v15  ;;  %6053 = vst [vmem:[#allocation119_spill] sm:$0xff] %v4727_v1  ;;  %6054 = vst [vmem:[#allocation120_spill] sm:$0xff] %v4729_v51 }
 0x18b   :  { %1903 = vmatprep.subr.bf16.mxu1 %v4705_v3 }
 0x18e   :  { %2182 = vmatpush1.bf16.xpose.msra.mxu0 %v4690_v24 }
 0x18f   :  { %2183 = vmatprep.subr.bf16.mxu0 %v4692_v50  ;;  %v4738_v50 = vcombine.low %v137_v4, %v153_v58  ;;  %v4753_v4 = vcombine.high %v162_v12, %v178_v32  ;;  %v201_v58 = vld [vmem:[%s5738_s1 + $0x550] sm:$0xff] }
 0x191   :  { %6055 = vst [vmem:[#allocation121_spill] sm:$0xff] %v4738_v50  ;;  %6058 = vst [vmem:[#allocation124_spill] sm:$0xff] %v4753_v4 }
 0x192   :  { %1904 = vmatpush1.bf16.xpose.msra.mxu1 %v4703_v54 }
 0x193   :  { %1905 = vmatprep.subr.bf16.mxu1 %v4729_v51 }
 0x196   :  { %2184 = vmatpush1.bf16.xpose.msra.mxu0 %v4714_v16  ;;  %v185_v16 = vld [vmem:[%s5738_s1 + $0x4d0] sm:$0xff] }
 0x197   :  { %2185 = vmatprep.subr.bf16.mxu0 %v4716_v11  ;;  %v4740_v24 = vcombine.high %v169_v28, %v185_v16  ;;  %v4751_v11 = vcombine.low %v162_v12, %v178_v32  ;;  %v4762_v46 = vcombine.low %v169_v28, %v185_v16  ;;  %v194_v12 = vld [vmem:[%s5738_s1 + $0x518] sm:$0xff]  ;;  %v233_v28 = vld [vmem:[%s5738_s1 + $0x650] sm:$0xff] }
 0x198   :  { %v210_v32 = vld [vmem:[%s5738_s1 + $0x598] sm:$0xff] }
 0x199   :  { %6056 = vst [vmem:[#allocation122_spill] sm:$0xff] %v4740_v24  ;;  %6057 = vst [vmem:[#allocation123_spill] sm:$0xff] %v4751_v11  ;;  %v4777_v16 = vcombine.high %v194_v12, %v210_v32 }
 0x19a   :  { %1906 = vmatpush1.bf16.xpose.msra.mxu1 %v4727_v1  ;;  %6059 = vst [vmem:[#allocation125_spill] sm:$0xff] %v4762_v46  ;;  %v74_v1 = vld [vmem:[%s5738_s1 + $0x158] sm:$0xff] }
 0x19b   :  { %1907 = vmatprep.subr.bf16.mxu1 %v4753_v4  ;;  %6062 = vst [vmem:[#allocation128_spill] sm:$0xff] %v4777_v16 }
 0x19e   :  { %2186 = vmatpush1.bf16.xpose.msra.mxu0 %v4738_v50  ;;  %v217_v50 = vld [vmem:[%s5738_s1 + $0x5d0] sm:$0xff] }
 0x19f   :  { %2187 = vmatprep.subr.bf16.mxu0 %v4740_v24  ;;  %v4764_v43 = vcombine.high %v201_v58, %v217_v50  ;;  %v4775_v24 = vcombine.low %v194_v12, %v210_v32  ;;  %v226_v12 = vld [vmem:[%s5738_s1 + $0x618] sm:$0xff] }
 0x1a0   :  { %v242_v32 = vld [vmem:[%s5738_s1 + $0x698] sm:$0xff] }
 0x1a1   :  { %6060 = vst [vmem:[#allocation126_spill] sm:$0xff] %v4764_v43  ;;  %6061 = vst [vmem:[#allocation127_spill] sm:$0xff] %v4775_v24 }
 0x1a2   :  { %1908 = vmatpush1.bf16.xpose.msra.mxu1 %v4751_v11  ;;  %v4786_v11 = vcombine.low %v201_v58, %v217_v50  ;;  %v4801_v50 = vcombine.high %v226_v12, %v242_v32  ;;  %v265_v58 = vld [vmem:[%s5738_s1 + $0x750] sm:$0xff] }
 0x1a3   :  { %1909 = vmatprep.subr.bf16.mxu1 %v4777_v16 }
 0x1a4   :  { %6063 = vst [vmem:[#allocation129_spill] sm:$0xff] %v4786_v11  ;;  %6066 = vst [vmem:[#allocation132_spill] sm:$0xff] %v4801_v50 }
 0x1a6   :  { %2188 = vmatpush1.bf16.xpose.msra.mxu0 %v4762_v46  ;;  %v249_v46 = vld [vmem:[%s5738_s1 + $0x6d0] sm:$0xff] }
 0x1a7   :  { %2189 = vmatprep.subr.bf16.mxu0 %v4764_v43  ;;  %v4788_v4 = vcombine.high %v233_v28, %v249_v46  ;;  %v4799_v43 = vcombine.low %v226_v12, %v242_v32  ;;  %v258_v12 = vld [vmem:[%s5738_s1 + $0x718] sm:$0xff] }
 0x1a8   :  { %v274_v32 = vld [vmem:[%s5738_s1 + $0x798] sm:$0xff] }
 0x1a9   :  { %6064 = vst [vmem:[#allocation130_spill] sm:$0xff] %v4788_v4  ;;  %6065 = vst [vmem:[#allocation131_spill] sm:$0xff] %v4799_v43 }
 0x1aa   :  { %1910 = vmatpush1.bf16.xpose.msra.mxu1 %v4775_v24  ;;  %v4810_v24 = vcombine.low %v233_v28, %v249_v46  ;;  %v4825_v46 = vcombine.high %v258_v12, %v274_v32  ;;  %v42_v28 = vld [vmem:[%s5738_s1 + $0x58] sm:$0xff] }
 0x1ab   :  { %1911 = vmatprep.subr.bf16.mxu1 %v4801_v50 }
 0x1ac   :  { %6067 = vst [vmem:[#allocation133_spill] sm:$0xff] %v4810_v24  ;;  %6070 = vst [vmem:[#allocation136_spill] sm:$0xff] %v4825_v46 }
 0x1ae   :  { %2190 = vmatpush1.bf16.xpose.msra.mxu0 %v4786_v11  ;;  %v281_v11 = vld [vmem:[%s5738_s1 + $0x7d0] sm:$0xff] }
 0x1af   :  { %2191 = vmatprep.subr.bf16.mxu0 %v4788_v4  ;;  %v4812_v16 = vcombine.high %v265_v58, %v281_v11  ;;  %v4823_v4 = vcombine.low %v258_v12, %v274_v32  ;;  %v3680_v12 = vld [vmem:[%s5739_s0 + $0x20] sm:$0xff] }
 0x1b0   :  { %v296_v32 = vunpack.c.l.bf16 %v3680_v12  ;;  %v297_v51 = vunpack.c.h.bf16 %v3680_v12 }
 0x1b1   :  { %6068 = vst [vmem:[#allocation134_spill] sm:$0xff] %v4812_v16  ;;  %6069 = vst [vmem:[#allocation135_spill] sm:$0xff] %v4823_v4 }
 0x1b2   :  { %1912 = vmatpush1.bf16.xpose.msra.mxu1 %v4799_v43  ;;  %v4834_v43 = vcombine.low %v265_v58, %v281_v11  ;;  %v4851_v11 = vld [vmem:[%s5739_s0 + $0x58] sm:$0xff]  ;;  %v328_v19 = vmul.f32 %v296_v32, %v296_v32  ;;  %v3682_v32 = vld [vmem:[%s5739_s0 + $0x30] sm:$0xff] }
 0x1b3   :  { %1913 = vmatprep.subr.bf16.mxu1 %v4825_v46 }
 0x1b4   :  { %6071 = vst [vmem:[#allocation137_spill] sm:$0xff] %v4834_v43 }
 0x1b6   :  { %2192 = vmatpush1.bf16.xpose.msra.mxu0 %v4810_v24  ;;  %v58_v24 = vld [vmem:[%s5738_s1 + $0xd8] sm:$0xff] }
 0x1b7   :  { %2193 = vmatprep.subr.bf16.mxu0 %v4812_v16  ;;  %v4836_v50 = vcombine.high %v42_v28, %v58_v24  ;;  %v18_v16 = vld [vmem:[%s5739_s0 + $0x18] sm:$0xff]  ;;  %v4861_v15 = vcombine.low %v42_v28, %v58_v24  ;;  %v329_v24 = vmul.f32 %v297_v51, %v297_v51 }
 0x1b8   :  { %v294_v58 = vunpack.c.l.bf16 %v18_v16  ;;  %v3264_v46 = vcombine.low %v18_v16, %v18_v16 }
 0x1b9   :  { %6072 = vst [vmem:[#allocation138_spill] sm:$0xff] %v4836_v50 }
 0x1ba   :  { %1914 = vmatpush1.bf16.xpose.msra.mxu1 %v4823_v4  ;;  %v3265_v4 = vcombine.high %v18_v16, %v18_v16  ;;  %v326_v54 = vmul.f32 %v294_v58, %v294_v58  ;;  %v300_v58 = vunpack.c.l.bf16 %v3682_v32 }
 0x1bb   :  { %2454 = vmatprep.subr.bf16.mxu1 %v4026_v37  ;;  %v295_v37 = vunpack.c.h.bf16 %v18_v16  ;;  %v3281_v16 = vcombine.high %v4851_v11, %v4851_v11 }
 0x1bc   :  { %1931 = vmatprep.mubr.bf16.mxu1 %v3265_v4  ;;  %v357_v12 = vadd.f32 %v4669_v44, %v326_v54  ;;  %v299_v4 = vunpack.c.h.bf16 %v3681_v6  ;;  %v106_v6 = vld [vmem:[%s5738_s1 + $0x258] sm:$0xff]  ;;  %v332_v51 = vmul.f32 %v300_v58, %v300_v58 }
 0x1bd   :  { %v327_v3 = vmul.f32 %v295_v37, %v295_v37 }
 0x1be   :  { %2194 = vmatpush1.bf16.xpose.msra.mxu0 %v4834_v43  ;;  %v90_v43 = vld [vmem:[%s5738_s1 + $0x1d8] sm:$0xff] }
 0x1bf   :  { %2219 = vmatprep.subr.bf16.mxu0 %v4836_v50  ;;  %v3278_v50 = vcombine.low %v4646_v23, %v4646_v23  ;;  %v4868_v47 = vcombine.high %v74_v1, %v90_v43  ;;  %v358_v28 = vadd.f32 %v357_v12, %v327_v3  ;;  %v4886_v3 = vcombine.low %v74_v1, %v90_v43  ;;  %v138_v1 = vld [vmem:[%s5738_s1 + $0x358] sm:$0xff] }
 0x1c1   :  { %1932 = vmatmul.mubr.bf16.vlgmr.msra.gmra.mrb[0].mxu1 %v3264_v46  ;;  %v330_v46 = vmul.f32 %v298_v27, %v298_v27  ;;  %v359_v44 = vadd.f32 %v358_v28, %v328_v19  ;;  %v331_v27 = vmul.f32 %v299_v4, %v299_v4  ;;  %v302_v19 = vunpack.c.l.bf16 %v4024_v34 }
 0x1c2   :  { %2455 = vmatpush1.bf16.msra.mxu1 %v4028_v40  ;;  %v122_v40 = vld [vmem:[%s5738_s1 + $0x2d8] sm:$0xff] }
 0x1c3   :  { %2456 = vmatprep.subr.bf16.mxu1 %v4054_v14  ;;  %v301_v14 = vunpack.c.h.bf16 %v3682_v32  ;;  %v360_v54 = vadd.f32 %v359_v44, %v329_v24  ;;  %v4904_v24 = vcombine.low %v106_v6, %v122_v40 }
 0x1c5   :  { %2212 = vmatmul.mubr.bf16.vlgmr.msra.gmra.mrb[0].mxu0 %v3278_v50  ;;  %v4889_v50 = vcombine.high %v106_v6, %v122_v40  ;;  %v333_v37 = vmul.f32 %v301_v14, %v301_v14  ;;  %v282_v6 = vld [vmem:[%s5738_s1 + $0x7d8] sm:$0xff]  ;;  %v43_v14 = vld [vmem:[%s5738_s1 + $0x60] sm:$0xff] }
 0x1c6   :  { %2220 = vmatpush1.bf16.xpose.msra.mxu0 %v4861_v15  ;;  %2251 = vmatprep.mubr.bf16.mxu0 %v3281_v16  ;;  %v303_v16 = vunpack.c.h.bf16 %v4024_v34 }
 0x1c7   :  { %2221 = vmatprep.subr.bf16.mxu0 %v4868_v47  ;;  %2457 = vmatpush1.bf16.msra.mxu1 %v4056_v17  ;;  %v361_v17 = vadd.f32 %v360_v54, %v330_v46  ;;  %v186_v46 = vld [vmem:[%s5738_s1 + $0x4d8] sm:$0xff]  ;;  %v59_v54 = vld [vmem:[%s5738_s1 + $0xe0] sm:$0xff] }
 0x1c8   :  { %2458 = vmatprep.subr.bf16.mxu1 %v4078_v0  ;;  %v334_v0 = vmul.f32 %v302_v19, %v302_v19  ;;  %v335_v34 = vmul.f32 %v303_v16, %v303_v16  ;;  %v4976_v19 = vcombine.high %v43_v14, %v59_v54  ;;  %v91_v16 = vld [vmem:[%s5738_s1 + $0x1e0] sm:$0xff] }
 0x1c9   :  { %v362_v12 = vadd.f32 %v361_v17, %v331_v27  ;;  %v4983_v17 = vld [vmem:[%s5739_s0 + $0x60] sm:$0xff] }
 0x1ca   :  { %6073 = vst [vmem:[#allocation139_spill] sm:$0xff] %v4976_v19 }
 0x1cb   :  { %2459 = vmatpush1.bf16.msra.mxu1 %v4080_v42  ;;  %v363_v43 = vadd.f32 %v362_v12, %v332_v51  ;;  %v3280_v12 = vcombine.low %v4851_v11, %v4851_v11 }
 0x1cc   :  { %2460 = vmatprep.subr.bf16.mxu1 %v4102_v57  ;;  %v154_v57 = vld [vmem:[%s5738_s1 + $0x3d8] sm:$0xff] }
 0x1cd   :  { %v364_v42 = vadd.f32 %v363_v43, %v333_v37  ;;  %v4906_v4 = vcombine.high %v138_v1, %v154_v57  ;;  %v75_v37 = vld [vmem:[%s5738_s1 + $0x160] sm:$0xff]  ;;  %v3283_v43 = vcombine.high %v4983_v17, %v4983_v17 }
 0x1ce   :  { %2222 = vmatpush1.bf16.xpose.msra.mxu0 %v4886_v3 }
 0x1cf   :  { %2223 = vmatprep.subr.bf16.mxu0 %v4889_v50  ;;  %2461 = vmatpush1.bf16.msra.mxu1 %v4104_v26  ;;  %v365_v28 = vadd.f32 %v364_v42, %v334_v0  ;;  %v4993_v0 = vcombine.low %v43_v14, %v59_v54  ;;  %v5007_v42 = vcombine.low %v75_v37, %v91_v16  ;;  %v203_v14 = vld [vmem:[%s5738_s1 + $0x560] sm:$0xff] }
 0x1d0   :  { %2462 = vmatprep.subr.bf16.mxu1 %v4126_v22  ;;  %v170_v22 = vld [vmem:[%s5738_s1 + $0x458] sm:$0xff]  ;;  %v219_v54 = vld [vmem:[%s5738_s1 + $0x5e0] sm:$0xff] }
 0x1d1   :  { %v4910_v26 = vadd.f32 %v365_v28, %v335_v34  ;;  %v4938_v32 = vcombine.low %v170_v22, %v186_v46  ;;  %6074 = vst [vmem:[#allocation140_spill] sm:$0xff] %v4993_v0  ;;  %v123_v34 = vld [vmem:[%s5738_s1 + $0x2e0] sm:$0xff]  ;;  %6076 = vst [vmem:[#allocation142_spill] sm:$0xff] %v5007_v42 }
 0x1d3   :  { %2463 = vmatpush1.bf16.msra.mxu1 %v4128_v49  ;;  %v4922_v49 = vcombine.low %v138_v1, %v154_v57  ;;  %v4997_v1 = vcombine.high %v75_v37, %v91_v16  ;;  %v107_v57 = vld [vmem:[%s5738_s1 + $0x260] sm:$0xff]  ;;  %v5045_v16 = vcombine.high %v203_v14, %v219_v54 }
 0x1d4   :  { %2464 = vmatprep.subr.bf16.mxu1 %v4150_v8  ;;  %v4924_v8 = vcombine.high %v170_v22, %v186_v46  ;;  %v5009_v28 = vcombine.high %v107_v57, %v123_v34  ;;  %v139_v22 = vld [vmem:[%s5738_s1 + $0x360] sm:$0xff] }
 0x1d5   :  { %6075 = vst [vmem:[#allocation141_spill] sm:$0xff] %v4997_v1  ;;  %v155_v46 = vld [vmem:[%s5738_s1 + $0x3e0] sm:$0xff]  ;;  %6083 = vst [vmem:[#allocation149_spill] sm:$0xff] %v5045_v16 }
 0x1d6   :  { %2224 = vmatpush1.bf16.xpose.msra.mxu0 %v4904_v24  ;;  %6077 = vst [vmem:[#allocation143_spill] sm:$0xff] %v5009_v28 }
 0x1d7   :  { %2225 = vmatprep.subr.bf16.mxu0 %v4906_v4  ;;  %2465 = vmatpush1.bf16.msra.mxu1 %v4152_v56  ;;  %v202_v56 = vld [vmem:[%s5738_s1 + $0x558] sm:$0xff] }
 0x1d8   :  { %2466 = vmatprep.subr.bf16.mxu1 %v4174_v61  ;;  %v218_v61 = vld [vmem:[%s5738_s1 + $0x5d8] sm:$0xff] }
 0x1d9   :  { %v4950_v58 = vcombine.low %v202_v56, %v218_v61 }
 0x1db   :  { %2467 = vmatpush1.bf16.msra.mxu1 %v4176_v18  ;;  %v4940_v18 = vcombine.high %v202_v56, %v218_v61  ;;  %v5019_v56 = vcombine.low %v107_v57, %v123_v34  ;;  %v5021_v61 = vcombine.high %v139_v22, %v155_v46  ;;  %v5055_v57 = vcombine.low %v203_v14, %v219_v54  ;;  %v44_v14 = vld [vmem:[%s5738_s1 + $0x68] sm:$0xff] }
 0x1dc   :  { %2468 = vmatprep.subr.bf16.mxu1 %v4198_v53  ;;  %v234_v53 = vld [vmem:[%s5738_s1 + $0x658] sm:$0xff]  ;;  %v60_v54 = vld [vmem:[%s5738_s1 + $0xe8] sm:$0xff] }
 0x1dd   :  { %6078 = vst [vmem:[#allocation144_spill] sm:$0xff] %v5019_v56  ;;  %6079 = vst [vmem:[#allocation145_spill] sm:$0xff] %v5021_v61 }
 0x1de   :  { %2226 = vmatpush1.bf16.xpose.msra.mxu0 %v4922_v49  ;;  %6084 = vst [vmem:[#allocation150_spill] sm:$0xff] %v5055_v57 }
 0x1df   :  { %2227 = vmatprep.subr.bf16.mxu0 %v4924_v8  ;;  %2469 = vmatpush1.bf16.msra.mxu1 %v4200_v7  ;;  %v250_v7 = vld [vmem:[%s5738_s1 + $0x6d8] sm:$0xff] }
 0x1e0   :  { %2495 = vmatprep.subr.bf16.mxu1 %v4242_v30  ;;  %v4952_v44 = vcombine.high %v234_v53, %v250_v7  ;;  %v266_v30 = vld [vmem:[%s5738_s1 + $0x758] sm:$0xff]  ;;  %v4962_v40 = vcombine.low %v234_v53, %v250_v7  ;;  %v171_v53 = vld [vmem:[%s5738_s1 + $0x460] sm:$0xff] }
 0x1e1   :  { %v4964_v27 = vcombine.high %v266_v30, %v282_v6  ;;  %v4974_v51 = vcombine.low %v266_v30, %v282_v6  ;;  %v187_v7 = vld [vmem:[%s5738_s1 + $0x4e0] sm:$0xff]  ;;  %v5031_v30 = vcombine.low %v139_v22, %v155_v46 }
 0x1e2   :  { %v5033_v6 = vcombine.high %v171_v53, %v187_v7  ;;  %v5043_v37 = vcombine.low %v171_v53, %v187_v7  ;;  %v267_v22 = vld [vmem:[%s5738_s1 + $0x760] sm:$0xff] }
 0x1e3   :  { %6080 = vst [vmem:[#allocation146_spill] sm:$0xff] %v5031_v30  ;;  %v283_v46 = vld [vmem:[%s5738_s1 + $0x7e0] sm:$0xff] }
 0x1e4   :  { %6081 = vst [vmem:[#allocation147_spill] sm:$0xff] %v5033_v6  ;;  %6082 = vst [vmem:[#allocation148_spill] sm:$0xff] %v5043_v37  ;;  %v5069_v7 = vcombine.high %v267_v22, %v283_v46 }
 0x1e6   :  { %2228 = vmatpush1.bf16.xpose.msra.mxu0 %v4938_v32  ;;  %6087 = vst [vmem:[#allocation153_spill] sm:$0xff] %v5069_v7 }
 0x1e7   :  { %2229 = vmatprep.subr.bf16.mxu0 %v4940_v18 }
 0x1ee   :  { %2230 = vmatpush1.bf16.xpose.msra.mxu0 %v4950_v58 }
 0x1ef   :  { %2231 = vmatprep.subr.bf16.mxu0 %v4952_v44 }
 0x1f6   :  { %2232 = vmatpush1.bf16.xpose.msra.mxu0 %v4962_v40 }
 0x1f7   :  { %2233 = vmatprep.subr.bf16.mxu0 %v4964_v27 }
 0x1fe   :  { %2234 = vmatpush1.bf16.xpose.msra.mxu0 %v4974_v51 }
 0x1ff   :  { %2259 = vmatprep.subr.bf16.mxu0 %v4976_v19 }
 0x205   :  { %2252 = vmatmul.mubr.bf16.vlgmr.msra.gmra.mrb[0].mxu0 %v3280_v12  ;;  %v235_v12 = vld [vmem:[%s5738_s1 + $0x660] sm:$0xff] }
 0x206   :  { %2260 = vmatpush1.bf16.xpose.msra.mxu0 %v4993_v0  ;;  %2291 = vmatprep.mubr.bf16.mxu0 %v3283_v43  ;;  %v251_v43 = vld [vmem:[%s5738_s1 + $0x6e0] sm:$0xff]  ;;  %v312_v0 = vunpack.c.l.bf16 %v4983_v17 }
 0x207   :  { %2261 = vmatprep.subr.bf16.mxu0 %v4997_v1  ;;  %v5057_v34 = vcombine.high %v235_v12, %v251_v43  ;;  %v5067_v53 = vcombine.low %v235_v12, %v251_v43  ;;  %v5088_v12 = vld [vmem:[%s5739_s0 + $0x68] sm:$0xff] }
 0x208   :  { %v76_v43 = vld [vmem:[%s5738_s1 + $0x168] sm:$0xff] }
 0x209   :  { %6085 = vst [vmem:[#allocation151_spill] sm:$0xff] %v5057_v34  ;;  %6086 = vst [vmem:[#allocation152_spill] sm:$0xff] %v5067_v53 }
 0x20e   :  { %2262 = vmatpush1.bf16.xpose.msra.mxu0 %v5007_v42  ;;  %v308_v42 = vunpack.c.l.bf16 %v4646_v23 }
 0x20f   :  { %2263 = vmatprep.subr.bf16.mxu0 %v5009_v28 }
 0x216   :  { %2264 = vmatpush1.bf16.xpose.msra.mxu0 %v5019_v56  ;;  %v307_v56 = vunpack.c.h.bf16 %v4440_v38 }
 0x217   :  { %2265 = vmatprep.subr.bf16.mxu0 %v5021_v61 }
 0x21e   :  { %2266 = vmatpush1.bf16.xpose.msra.mxu0 %v5031_v30 }
 0x21f   :  { %2267 = vmatprep.subr.bf16.mxu0 %v5033_v6 }
 0x226   :  { %2268 = vmatpush1.bf16.xpose.msra.mxu0 %v5043_v37  ;;  %v3284_v37 = vcombine.low %v5088_v12, %v5088_v12 }
 0x227   :  { %2269 = vmatprep.subr.bf16.mxu0 %v5045_v16 }
 0x22e   :  { %2270 = vmatpush1.bf16.xpose.msra.mxu0 %v5055_v57  ;;  %v5081_v57 = vcombine.high %v44_v14, %v60_v54 }
 0x22f   :  { %2271 = vmatprep.subr.bf16.mxu0 %v5057_v34  ;;  %v5079_v34 = vcombine.low %v267_v22, %v283_v46  ;;  %v92_v22 = vld [vmem:[%s5738_s1 + $0x1e8] sm:$0xff]  ;;  %v3282_v46 = vcombine.low %v4983_v17, %v4983_v17 }
 0x230   :  { %6089 = vst [vmem:[#allocation155_spill] sm:$0xff] %v5081_v57 }
 0x231   :  { %6088 = vst [vmem:[#allocation154_spill] sm:$0xff] %v5079_v34 }
 0x236   :  { %2272 = vmatpush1.bf16.xpose.msra.mxu0 %v5067_v53  ;;  %v108_v53 = vld [vmem:[%s5738_s1 + $0x268] sm:$0xff] }
 0x237   :  { %2273 = vmatprep.subr.bf16.mxu0 %v5069_v7  ;;  %v5098_v7 = vcombine.low %v44_v14, %v60_v54  ;;  %v124_v14 = vld [vmem:[%s5738_s1 + $0x2e8] sm:$0xff]  ;;  %v5112_v54 = vcombine.low %v76_v43, %v92_v22 }
 0x238   :  { %v5114_v16 = vcombine.high %v108_v53, %v124_v14 }
 0x239   :  { %6090 = vst [vmem:[#allocation156_spill] sm:$0xff] %v5098_v7  ;;  %6092 = vst [vmem:[#allocation158_spill] sm:$0xff] %v5112_v54 }
 0x23a   :  { %6093 = vst [vmem:[#allocation159_spill] sm:$0xff] %v5114_v16 }
 0x23e   :  { %2274 = vmatpush1.bf16.xpose.msra.mxu0 %v5079_v34  ;;  %v5102_v34 = vcombine.high %v76_v43, %v92_v22  ;;  %v172_v43 = vld [vmem:[%s5738_s1 + $0x468] sm:$0xff] }
 0x23f   :  { %2299 = vmatprep.subr.bf16.mxu0 %v5081_v57  ;;  %v3285_v57 = vcombine.high %v5088_v12, %v5088_v12  ;;  %v188_v22 = vld [vmem:[%s5738_s1 + $0x4e8] sm:$0xff] }
 0x240   :  { %6091 = vst [vmem:[#allocation157_spill] sm:$0xff] %v5102_v34 }
 0x245   :  { %2292 = vmatmul.mubr.bf16.vlgmr.msra.gmra.mrb[0].mxu0 %v3282_v46  ;;  %v156_v46 = vld [vmem:[%s5738_s1 + $0x3e8] sm:$0xff] }
 0x246   :  { %2300 = vmatpush1.bf16.xpose.msra.mxu0 %v5098_v7  ;;  %2331 = vmatprep.mubr.bf16.mxu0 %v3285_v57  ;;  %v140_v57 = vld [vmem:[%s5738_s1 + $0x368] sm:$0xff] }
 0x247   :  { %2301 = vmatprep.subr.bf16.mxu0 %v5102_v34  ;;  %v5124_v34 = vcombine.low %v108_v53, %v124_v14  ;;  %v5126_v7 = vcombine.high %v140_v57, %v156_v46  ;;  %v204_v53 = vld [vmem:[%s5738_s1 + $0x568] sm:$0xff] }
 0x248   :  { %v220_v14 = vld [vmem:[%s5738_s1 + $0x5e8] sm:$0xff] }
 0x249   :  { %6094 = vst [vmem:[#allocation160_spill] sm:$0xff] %v5124_v34  ;;  %6095 = vst [vmem:[#allocation161_spill] sm:$0xff] %v5126_v7 }
 0x24e   :  { %2302 = vmatpush1.bf16.xpose.msra.mxu0 %v5112_v54  ;;  %v5138_v54 = vcombine.high %v172_v43, %v188_v22 }
 0x24f   :  { %2303 = vmatprep.subr.bf16.mxu0 %v5114_v16  ;;  %v5136_v16 = vcombine.low %v140_v57, %v156_v46  ;;  %v236_v57 = vld [vmem:[%s5738_s1 + $0x668] sm:$0xff] }
 0x250   :  { %6097 = vst [vmem:[#allocation163_spill] sm:$0xff] %v5138_v54  ;;  %v252_v46 = vld [vmem:[%s5738_s1 + $0x6e8] sm:$0xff] }
 0x251   :  { %6096 = vst [vmem:[#allocation162_spill] sm:$0xff] %v5136_v16 }
 0x256   :  { %2304 = vmatpush1.bf16.xpose.msra.mxu0 %v5124_v34  ;;  %v5150_v34 = vcombine.high %v204_v53, %v220_v14 }
 0x257   :  { %2305 = vmatprep.subr.bf16.mxu0 %v5126_v7  ;;  %v5148_v7 = vcombine.low %v172_v43, %v188_v22  ;;  %v268_v43 = vld [vmem:[%s5738_s1 + $0x768] sm:$0xff] }
 0x258   :  { %6099 = vst [vmem:[#allocation165_spill] sm:$0xff] %v5150_v34  ;;  %v284_v22 = vld [vmem:[%s5738_s1 + $0x7e8] sm:$0xff] }
 0x259   :  { %6098 = vst [vmem:[#allocation164_spill] sm:$0xff] %v5148_v7 }
 0x25e   :  { %2306 = vmatpush1.bf16.xpose.msra.mxu0 %v5136_v16  ;;  %v5162_v16 = vcombine.high %v236_v57, %v252_v46 }
 0x25f   :  { %2307 = vmatprep.subr.bf16.mxu0 %v5138_v54  ;;  %v5160_v54 = vcombine.low %v204_v53, %v220_v14  ;;  %v45_v53 = vld [vmem:[%s5738_s1 + $0x70] sm:$0xff] }
 0x260   :  { %6101 = vst [vmem:[#allocation167_spill] sm:$0xff] %v5162_v16  ;;  %v61_v14 = vld [vmem:[%s5738_s1 + $0xf0] sm:$0xff] }
 0x261   :  { %6100 = vst [vmem:[#allocation166_spill] sm:$0xff] %v5160_v54  ;;  %v5207_v6 = vcombine.low %v45_v53, %v61_v14 }
 0x263   :  { %6106 = vst [vmem:[#allocation172_spill] sm:$0xff] %v5207_v6 }
 0x266   :  { %2308 = vmatpush1.bf16.xpose.msra.mxu0 %v5148_v7  ;;  %v5174_v7 = vcombine.high %v268_v43, %v284_v22 }
 0x267   :  { %2309 = vmatprep.subr.bf16.mxu0 %v5150_v34  ;;  %v5172_v34 = vcombine.low %v236_v57, %v252_v46  ;;  %v3683_v57 = vld [vmem:[%s5739_s0 + $0x40] sm:$0xff] }
 0x268   :  { %6103 = vst [vmem:[#allocation169_spill] sm:$0xff] %v5174_v7  ;;  %v304_v46 = vunpack.c.l.bf16 %v3683_v57 }
 0x269   :  { %6102 = vst [vmem:[#allocation168_spill] sm:$0xff] %v5172_v34 }
 0x26e   :  { %2310 = vmatpush1.bf16.xpose.msra.mxu0 %v5160_v54  ;;  %v5186_v54 = vcombine.high %v45_v53, %v61_v14  ;;  %v339_v53 = vmul.f32 %v307_v56, %v307_v56  ;;  %v309_v14 = vunpack.c.h.bf16 %v4646_v23  ;;  %v311_v23 = vunpack.c.h.bf16 %v4851_v11 }
 0x26f   :  { %2311 = vmatprep.subr.bf16.mxu0 %v5162_v16  ;;  %v5184_v16 = vcombine.low %v268_v43, %v284_v22  ;;  %v77_v43 = vld [vmem:[%s5738_s1 + $0x170] sm:$0xff] }
 0x270   :  { %6105 = vst [vmem:[#allocation171_spill] sm:$0xff] %v5186_v54  ;;  %v93_v22 = vld [vmem:[%s5738_s1 + $0x1f0] sm:$0xff]  ;;  %v341_v56 = vmul.f32 %v309_v14, %v309_v14 }
 0x271   :  { %6104 = vst [vmem:[#allocation170_spill] sm:$0xff] %v5184_v16 }
 0x276   :  { %2312 = vmatpush1.bf16.xpose.msra.mxu0 %v5172_v34  ;;  %v305_v34 = vunpack.c.h.bf16 %v3683_v57  ;;  %v5211_v57 = vcombine.high %v77_v43, %v93_v22 }
 0x277   :  { %2313 = vmatprep.subr.bf16.mxu0 %v5174_v7  ;;  %v5196_v7 = vld [vmem:[%s5739_s0 + $0x70] sm:$0xff] }
 0x278   :  { %v3287_v30 = vcombine.high %v5196_v7, %v5196_v7  ;;  %6107 = vst [vmem:[#allocation173_spill] sm:$0xff] %v5211_v57  ;;  %v337_v61 = vmul.f32 %v305_v34, %v305_v34  ;;  %v109_v34 = vld [vmem:[%s5738_s1 + $0x270] sm:$0xff] }
 0x27e   :  { %2314 = vmatpush1.bf16.xpose.msra.mxu0 %v5184_v16  ;;  %v336_v16 = vmul.f32 %v304_v46, %v304_v46 }
 0x27f   :  { %2339 = vmatprep.subr.bf16.mxu0 %v5186_v54  ;;  %v306_v54 = vunpack.c.l.bf16 %v4440_v38  ;;  %v125_v38 = vld [vmem:[%s5738_s1 + $0x2f0] sm:$0xff] }
 0x280   :  { %v367_v46 = vadd.f32 %v4910_v26, %v336_v16  ;;  %v5228_v16 = vcombine.high %v109_v34, %v125_v38 }
 0x281   :  { %v338_v28 = vmul.f32 %v306_v54, %v306_v54  ;;  %v340_v54 = vmul.f32 %v308_v42, %v308_v42  ;;  %v343_v42 = vmul.f32 %v311_v23, %v311_v23  ;;  %v316_v23 = vunpack.c.l.bf16 %v5196_v7 }
 0x285   :  { %2332 = vmatmul.mubr.bf16.vlgmr.msra.gmra.mrb[0].mxu0 %v3284_v37  ;;  %v368_v37 = vadd.f32 %v367_v46, %v337_v61  ;;  %v313_v61 = vunpack.c.h.bf16 %v4983_v17  ;;  %v5242_v46 = vcombine.low %v109_v34, %v125_v38  ;;  %v315_v17 = vunpack.c.h.bf16 %v5088_v12 }
 0x286   :  { %2340 = vmatpush1.bf16.xpose.msra.mxu0 %v5207_v6  ;;  %2371 = vmatprep.mubr.bf16.mxu0 %v3287_v30  ;;  %v310_v6 = vunpack.c.l.bf16 %v4851_v11  ;;  %v5226_v30 = vcombine.low %v77_v43, %v93_v22  ;;  %v157_v11 = vld [vmem:[%s5738_s1 + $0x3f0] sm:$0xff]  ;;  %v314_v22 = vunpack.c.l.bf16 %v5088_v12 }
 0x287   :  { %2341 = vmatprep.subr.bf16.mxu0 %v5211_v57  ;;  %v369_v26 = vadd.f32 %v368_v37, %v338_v28  ;;  %v141_v28 = vld [vmem:[%s5738_s1 + $0x370] sm:$0xff]  ;;  %v345_v14 = vmul.f32 %v313_v61, %v313_v61 }
 0x288   :  { %v342_v1 = vmul.f32 %v310_v6, %v310_v6  ;;  %v344_v6 = vmul.f32 %v312_v0, %v312_v0  ;;  %v189_v12 = vld [vmem:[%s5738_s1 + $0x4f0] sm:$0xff] }
 0x289   :  { %v370_v57 = vadd.f32 %v369_v26, %v339_v53  ;;  %v5244_v53 = vcombine.high %v141_v28, %v157_v11 }
 0x28b   :  { %v371_v19 = vadd.f32 %v370_v57, %v340_v54  ;;  %6108 = vst [vmem:[#allocation174_spill] sm:$0xff] %v5244_v53 }
 0x28d   :  { %v372_v43 = vadd.f32 %v371_v19, %v341_v56  ;;  %v346_v19 = vmul.f32 %v314_v22, %v314_v22  ;;  %v317_v56 = vunpack.c.h.bf16 %v5196_v7 }
 0x28e   :  { %2342 = vmatpush1.bf16.xpose.msra.mxu0 %v5226_v30 }
 0x28f   :  { %2343 = vmatprep.subr.bf16.mxu0 %v5228_v16  ;;  %v373_v57 = vadd.f32 %v372_v43, %v342_v1  ;;  %v173_v1 = vld [vmem:[%s5738_s1 + $0x470] sm:$0xff]  ;;  %v5262_v43 = vld [vmem:[%s5739_s0 + $0x78] sm:$0xff] }
 0x290   :  { %v318_v22 = vunpack.c.l.bf16 %v5262_v43 }
 0x291   :  { %v374_v37 = vadd.f32 %v373_v57, %v343_v42  ;;  %v347_v42 = vmul.f32 %v315_v17, %v315_v17  ;;  %v348_v57 = vmul.f32 %v316_v23, %v316_v23 }
 0x293   :  { %v375_v0 = vadd.f32 %v374_v37, %v344_v6  ;;  %v5264_v6 = vcombine.low %v141_v28, %v157_v11  ;;  %v205_v28 = vld [vmem:[%s5738_s1 + $0x570] sm:$0xff] }
 0x294   :  { %v5247_v54 = vpop.f32.mrb[0].mxu1  ;;  %v221_v11 = vld [vmem:[%s5738_s1 + $0x5f0] sm:$0xff] }
 0x295   :  { %v1935_v26 = vpop.f32.mrb[1].mxu1  ;;  %v376_v61 = vadd.f32 %v375_v0, %v345_v14  ;;  %v350_v14 = vmul.f32 %v318_v22, %v318_v22  ;;  %v5278_v0 = vcombine.low %v173_v1, %v189_v12  ;;  %v253_v22 = vld [vmem:[%s5738_s1 + $0x6f0] sm:$0xff] }
 0x296   :  { %2344 = vmatpush1.bf16.xpose.msra.mxu0 %v5242_v46  ;;  %v1936_v34 = vpop.f32.mrb[2].mxu1  ;;  %v5267_v26 = vcombine.high %v173_v1, %v189_v12  ;;  %v269_v12 = vld [vmem:[%s5738_s1 + $0x770] sm:$0xff] }
 0x297   :  { %2345 = vmatprep.subr.bf16.mxu0 %v5244_v53  ;;  %v1937_v38 = vpop.f32.mrb[3].mxu1  ;;  %v377_v37 = vadd.f32 %v376_v61, %v346_v19  ;;  %v319_v34 = vunpack.c.h.bf16 %v5262_v43 }
 0x298   :  { %v349_v38 = vmul.f32 %v317_v56, %v317_v56 }
 0x299   :  { %v378_v53 = vadd.f32 %v377_v37, %v347_v42  ;;  %v351_v23 = vmul.f32 %v319_v34, %v319_v34  ;;  %v5280_v42 = vcombine.high %v205_v28, %v221_v11  ;;  %v285_v37 = vld [vmem:[%s5738_s1 + $0x7f0] sm:$0xff] }
 0x29b   :  { %v379_v17 = vadd.f32 %v378_v53, %v348_v57  ;;  %v237_v53 = vld [vmem:[%s5738_s1 + $0x670] sm:$0xff]  ;;  %v5290_v57 = vcombine.low %v205_v28, %v221_v11  ;;  %v5314_v28 = vcombine.low %v269_v12, %v285_v37 }
 0x29c   :  { %v5292_v1 = vcombine.high %v237_v53, %v253_v22  ;;  %v5302_v34 = vcombine.low %v237_v53, %v253_v22  ;;  %v3289_v53 = vcombine.high %v5262_v43, %v5262_v43 }
 0x29d   :  { %v380_v19 = vadd.f32 %v379_v17, %v349_v38  ;;  %6109 = vst [vmem:[#allocation175_spill] sm:$0xff] %v5290_v57  ;;  %v5304_v38 = vcombine.high %v269_v12, %v285_v37  ;;  %v62_v17 = vld [vmem:[%s5738_s1 + $0xf8] sm:$0xff]  ;;  %6113 = vst [vmem:[#allocation179_spill] sm:$0xff] %v5314_v28 }
 0x29e   :  { %2346 = vmatpush1.bf16.xpose.msra.mxu0 %v5264_v6  ;;  %6110 = vst [vmem:[#allocation176_spill] sm:$0xff] %v5292_v1  ;;  %6111 = vst [vmem:[#allocation177_spill] sm:$0xff] %v5302_v34  ;;  %v110_v12 = vld [vmem:[%s5738_s1 + $0x278] sm:$0xff] }
 0x29f   :  { %2347 = vmatprep.subr.bf16.mxu0 %v5267_v26  ;;  %v381_v56 = vadd.f32 %v380_v19, %v350_v14  ;;  %6112 = vst [vmem:[#allocation178_spill] sm:$0xff] %v5304_v38  ;;  %v46_v14 = vld [vmem:[%s5738_s1 + $0x78] sm:$0xff] }
 0x2a0   :  { %v5316_v11 = vcombine.high %v46_v14, %v62_v17  ;;  %v94_v19 = vld [vmem:[%s5738_s1 + $0x1f8] sm:$0xff] }
 0x2a1   :  { %v382_v61 = vadd.f32 %v381_v56, %v351_v23  ;;  %v78_v23 = vld [vmem:[%s5738_s1 + $0x178] sm:$0xff]  ;;  %v3286_v56 = vcombine.low %v5196_v7, %v5196_v7 }
 0x2a2   :  { %6114 = vst [vmem:[#allocation180_spill] sm:$0xff] %v5316_v11  ;;  %v5332_v22 = vcombine.high %v78_v23, %v94_v19  ;;  %v126_v7 = vld [vmem:[%s5738_s1 + $0x2f8] sm:$0xff]  ;;  %v5342_v37 = vcombine.low %v78_v23, %v94_v19 }
 0x2a3   :  { %383 = vadd.xlane.f32.xlu0 %v382_v61  ;;  %v5328_v61 = vcombine.low %v46_v14, %v62_v17  ;;  %v5344_v14 = vcombine.high %v110_v12, %v126_v7  ;;  %v142_v17 = vld [vmem:[%s5738_s1 + $0x378] sm:$0xff] }
 0x2a4   :  { %6116 = vst [vmem:[#allocation182_spill] sm:$0xff] %v5332_v22  ;;  %6117 = vst [vmem:[#allocation183_spill] sm:$0xff] %v5342_v37  ;;  %v174_v23 = vld [vmem:[%s5738_s1 + $0x478] sm:$0xff] }
 0x2a5   :  { %6115 = vst [vmem:[#allocation181_spill] sm:$0xff] %v5328_v61  ;;  %6118 = vst [vmem:[#allocation184_spill] sm:$0xff] %v5344_v14  ;;  %v190_v19 = vld [vmem:[%s5738_s1 + $0x4f8] sm:$0xff] }
 0x2a6   :  { %2348 = vmatpush1.bf16.xpose.msra.mxu0 %v5278_v0 }
 0x2a7   :  { %2349 = vmatprep.subr.bf16.mxu0 %v5280_v42 }
 0x2ae   :  { %2350 = vmatpush1.bf16.xpose.msra.mxu0 %v5290_v57 }
 0x2af   :  { %2351 = vmatprep.subr.bf16.mxu0 %v5292_v1 }
 0x2b6   :  { %2352 = vmatpush1.bf16.xpose.msra.mxu0 %v5302_v34 }
 0x2b7   :  { %2353 = vmatprep.subr.bf16.mxu0 %v5304_v38 }
 0x2be   :  { %2354 = vmatpush1.bf16.xpose.msra.mxu0 %v5314_v28 }
 0x2bf   :  { %2379 = vmatprep.subr.bf16.mxu0 %v5316_v11 }
 0x2c5   :  { %2372 = vmatmul.mubr.bf16.vlgmr.msra.gmra.mrb[0].mxu0 %v3286_v56  ;;  %v158_v56 = vld [vmem:[%s5738_s1 + $0x3f8] sm:$0xff] }
 0x2c6   :  { %2380 = vmatpush1.bf16.xpose.msra.mxu0 %v5328_v61  ;;  %2411 = vmatprep.mubr.bf16.mxu0 %v3289_v53  ;;  %v5354_v53 = vcombine.low %v110_v12, %v126_v7  ;;  %v206_v12 = vld [vmem:[%s5738_s1 + $0x578] sm:$0xff]  ;;  %v2420_v61 = vlaneseq }
 0x2c7   :  { %2381 = vmatprep.subr.bf16.mxu0 %v5332_v22  ;;  %v5356_v22 = vcombine.high %v142_v17, %v158_v56  ;;  %v222_v7 = vld [vmem:[%s5738_s1 + $0x5f8] sm:$0xff] }
 0x2c8   :  { %6119 = vst [vmem:[#allocation185_spill] sm:$0xff] %v5354_v53 }
 0x2c9   :  { %6120 = vst [vmem:[#allocation186_spill] sm:$0xff] %v5356_v22 }
 0x2ce   :  { %2382 = vmatpush1.bf16.xpose.msra.mxu0 %v5342_v37  ;;  %v5368_v37 = vcombine.high %v174_v23, %v190_v19 }
 0x2cf   :  { %2383 = vmatprep.subr.bf16.mxu0 %v5344_v14  ;;  %v5366_v14 = vcombine.low %v142_v17, %v158_v56  ;;  %v238_v17 = vld [vmem:[%s5738_s1 + $0x678] sm:$0xff] }
 0x2d0   :  { %6122 = vst [vmem:[#allocation188_spill] sm:$0xff] %v5368_v37  ;;  %v254_v56 = vld [vmem:[%s5738_s1 + $0x6f8] sm:$0xff] }
 0x2d1   :  { %6121 = vst [vmem:[#allocation187_spill] sm:$0xff] %v5366_v14 }
 0x2d6   :  { %2384 = vmatpush1.bf16.xpose.msra.mxu0 %v5354_v53  ;;  %v5380_v53 = vcombine.high %v206_v12, %v222_v7 }
 0x2d7   :  { %2385 = vmatprep.subr.bf16.mxu0 %v5356_v22  ;;  %v5378_v22 = vcombine.low %v174_v23, %v190_v19  ;;  %v270_v23 = vld [vmem:[%s5738_s1 + $0x778] sm:$0xff] }
 0x2d8   :  { %6124 = vst [vmem:[#allocation190_spill] sm:$0xff] %v5380_v53  ;;  %v286_v19 = vld [vmem:[%s5738_s1 + $0x7f8] sm:$0xff] }
 0x2d9   :  { %6123 = vst [vmem:[#allocation189_spill] sm:$0xff] %v5378_v22 }
 0x2de   :  { %2386 = vmatpush1.bf16.xpose.msra.mxu0 %v5366_v14  ;;  %v5392_v14 = vcombine.high %v238_v17, %v254_v56 }
 0x2df   :  { %2387 = vmatprep.subr.bf16.mxu0 %v5368_v37  ;;  %v5390_v37 = vcombine.low %v206_v12, %v222_v7  ;;  %v5408_v12 = vcombine.low %v270_v23, %v286_v19  ;;  %v3288_v7 = vcombine.low %v5262_v43, %v5262_v43 }
 0x2e0   :  { %6126 = vst [vmem:[#allocation192_spill] sm:$0xff] %v5392_v14 }
 0x2e1   :  { %6125 = vst [vmem:[#allocation191_spill] sm:$0xff] %v5390_v37  ;;  %6129 = vst [vmem:[#allocation195_spill] sm:$0xff] %v5408_v12 }
 0x2e6   :  { %2388 = vmatpush1.bf16.xpose.msra.mxu0 %v5378_v22  ;;  %v5404_v22 = vcombine.high %v270_v23, %v286_v19 }
 0x2e7   :  { %2389 = vmatprep.subr.bf16.mxu0 %v5380_v53  ;;  %v5402_v53 = vcombine.low %v238_v17, %v254_v56  ;;  %v2421_v17 = vand.u32 127, %v2420_v61 }
 0x2e8   :  { %6128 = vst [vmem:[#allocation194_spill] sm:$0xff] %v5404_v22 }
 0x2e9   :  { %6127 = vst [vmem:[#allocation193_spill] sm:$0xff] %v5402_v53  ;;  %vm2422_vm0 = vcmp.lt.s32.totalorder %v2421_v17, 100 }
 0x2ee   :  { %2390 = vmatpush1.bf16.xpose.msra.mxu0 %v5390_v37 }
 0x2ef   :  { %2391 = vmatprep.subr.bf16.mxu0 %v5392_v14 }
 0x2f6   :  { %2392 = vmatpush1.bf16.xpose.msra.mxu0 %v5402_v53 }
 0x2f7   :  { %2393 = vmatprep.subr.bf16.mxu0 %v5404_v22 }
 0x2fe   :  { %2394 = vmatpush1.bf16.xpose.msra.mxu0 %v5408_v12 }
 0x305   :  { %2412 = vmatmul.mubr.bf16.vlgmr.msra.gmra.mrb[0].mxu0 %v3288_v7 }
 0x330   :  { %v384_v14 = vpop.xlane.xlu0 %383 }
 0x331   :  { %v385_v37 = vmax.f32 %v384_v14, 1e-16 }
 0x333   :  { %3670 = vrsqrt.f32 %v385_v37 }
 0x33d   :  { %v3671_v56 = vpop.eup %3670 }
 0x3d8   :  { %v2413_v11 = vpop.f32.mrb[0].mxu0 }
 0x3d9   :  { %v3580_v28 = vadd.f32 %v2413_v11, %v5247_v54  ;;  %v2415_v53 = vpop.f32.mrb[1].mxu0 }
 0x3da   :  { %v2416_v38 = vpop.f32.mrb[2].mxu0 }
 0x3db   :  { %v2417_v23 = vpop.f32.mrb[3].mxu0  ;;  %v2419_v19 = vmul.f32 %v3671_v56, %v3580_v28  ;;  %v3684_v56 = vmov 0  }
 0x3dc   :  { %2486 = vmatprep.mubr.bf16.mxu1 %v3684_v56  ;;  %v3547_v23 = vld [vmem:[%s5740_s2] ss:$0 sm:$0xff] }
 0x3dd   :  { %v2423_v22 = vsel %vm2422_vm0, %v2419_v19, -inf }
 0x3de   :  { %2424 = vmax.xlane.f32.xlu0 %v2423_v22 }
 0x46b   :  { %v2425_v12 = vpop.xlane.xlu0 %2424 }
 0x46c   :  { %v2426_v34 = vsub.f32 %v2423_v22, %v2425_v12 }
 0x46e   :  { %v2427_v43 = vmul.f32 1.442695, %v2426_v34 }
 0x470   :  { %3672 = vpow2.f32 %v2427_v43 }
 0x47a   :  { %v3673_v7 = vpop.eup %3672 }
 0x47b   :  { %2429 = vadd.xlane.f32.xlu1 %v3673_v7 }
 0x508   :  { %v2430_v37 = vpop.xlane.xlu1 %2429 }
 0x509   :  { %3674 = vrcp.f32 %v2430_v37  ;;  %v6155_v37 = vld [vmem:[#allocation3_spill] sm:$0xff] }
 0x513   :  { %v3675_v61 = vpop.eup %3674 }
 0x514   :  { %v2432_v14 = vmul.f32 %v3675_v61, %v3673_v7  ;;  %v6154_v7 = vld [vmem:[#allocation2_spill] sm:$0xff]  ;;  %v6156_v61 = vld [vmem:[#allocation4_spill] sm:$0xff] }
 0x516   :  { %v3546_v1 = vadd.f32 -0.01, %v2432_v14 }
 0x518   :  { %v2436_v57 = vand.u32 2147483647, %v3546_v1  ;;  %v2434_v38 = vmax.f32 %v3546_v1, 0.0  ;;  %v6153_v1 = vld [vmem:[#allocation135_spill] sm:$0xff] }
 0x51a   :  { %v2437_v54 = vadd.f32 1e-15, %v2436_v57  ;;  %v2435_v11 = vmul.f32 %v2434_v38, %v2432_v14  ;;  %v6157_v14 = vld [vmem:[#allocation5_spill] sm:$0xff]  ;;  %v6159_v38 = vld [vmem:[#allocation7_spill] sm:$0xff] }
 0x51c   :  { %3676 = vrcp.f32 %v2437_v54  ;;  %v6158_v54 = vld [vmem:[#allocation6_spill] sm:$0xff] }
 0x526   :  { %v3677_v53 = vpop.eup %3676 }
 0x527   :  { %v2439_v28 = vmul.f32 %v3677_v53, %v2435_v11  ;;  %v6160_v11 = vld [vmem:[#allocation8_spill] sm:$0xff]  ;;  %v6161_v53 = vld [vmem:[#allocation9_spill] sm:$0xff] }
 0x529   :  { %v2440_v17 = vand.u32 2147483647, %v2439_v28 }
 0x52b   :  { %2441 = vadd.xlane.f32.xlu1 %v2440_v17  ;;  %v6163_v17 = vld [vmem:[#allocation11_spill] sm:$0xff] }
 0x5b8   :  { %v2442_v34 = vpop.xlane.xlu1 %2441 }
 0x5b9   :  { %v2443_v22 = vmax.f32 %v2442_v34, 1e-12  ;;  %v6164_v34 = vld [vmem:[#allocation12_spill] sm:$0xff] }
 0x5bb   :  { %3678 = vrcp.f32 %v2443_v22  ;;  %v6165_v22 = vld [vmem:[#allocation13_spill] sm:$0xff] }
 0x5c5   :  { %v3679_v12 = vpop.eup %3678 }
 0x5c6   :  { %v2445_v19 = vmul.f32 %v3679_v12, %v2439_v28  ;;  %v6162_v28 = vld [vmem:[#allocation10_spill] sm:$0xff] }
 0x5c7   :  { %v6166_v12 = vld [vmem:[#allocation14_spill] sm:$0xff] }
 0x5c8   :  { %v2452_v57 = vmul.f32 %v3547_v23, %v2445_v19  ;;  %v6167_v23 = vld [vmem:[#allocation15_spill] sm:$0xff]  ;;  %v6168_v19 = vld [vmem:[#allocation16_spill] sm:$0xff] }
 0x5ca   :  { %v5418_v43 = vpack.c.bf16 %v2452_v57, %v2452_v57  ;;  %v6169_v57 = vld [vmem:[#allocation17_spill] sm:$0xff] }
 0x5cc   :  { %2487 = vmatmul.mubr.bf16.vlgmr.msra.gmra.mrb[4].mxu1 %v5418_v43 }
 0x5cd   :  { %2496 = vmatpush1.bf16.msra.mxu1 %v4234_v45  ;;  %2527 = vmatprep.mubr.bf16.mxu1 %v3684_v56  ;;  %v6135_v45 = vld [vmem:[#allocation99_spill] sm:$0xff] }
 0x5ce   :  { %2497 = vmatprep.subr.bf16.mxu1 %v4266_v39  ;;  %v6137_v39 = vld [vmem:[#allocation103_spill] sm:$0xff] }
 0x5d1   :  { %2498 = vmatpush1.bf16.msra.mxu1 %v4264_v29  ;;  %v6136_v29 = vld [vmem:[#allocation104_spill] sm:$0xff] }
 0x5d2   :  { %2499 = vmatprep.subr.bf16.mxu1 %v4290_v33  ;;  %v6139_v33 = vld [vmem:[#allocation107_spill] sm:$0xff] }
 0x5d5   :  { %2500 = vmatpush1.bf16.msra.mxu1 %v4288_v9  ;;  %v6134_v9 = vld [vmem:[#allocation100_spill] sm:$0xff] }
 0x5d6   :  { %2501 = vmatprep.subr.bf16.mxu1 %v4314_v25  ;;  %v6140_v25 = vld [vmem:[#allocation112_spill] sm:$0xff] }
 0x5d9   :  { %2502 = vmatpush1.bf16.msra.mxu1 %v4312_v60  ;;  %v6138_v60 = vld [vmem:[#allocation108_spill] sm:$0xff] }
 0x5da   :  { %2503 = vmatprep.subr.bf16.mxu1 %v4338_v13  ;;  %v6141_v13 = vld [vmem:[#allocation111_spill] sm:$0xff] }
 0x5dd   :  { %2504 = vmatpush1.bf16.msra.mxu1 %v4336_v5  ;;  %v6133_v5 = vld [vmem:[#allocation95_spill] sm:$0xff] }
 0x5de   :  { %2505 = vmatprep.subr.bf16.mxu1 %v4362_v21  ;;  %v6142_v21 = vld [vmem:[#allocation116_spill] sm:$0xff] }
 0x5e1   :  { %2506 = vmatpush1.bf16.msra.mxu1 %v4360_v63  ;;  %v6132_v63 = vld [vmem:[#allocation96_spill] sm:$0xff] }
 0x5e2   :  { %2507 = vmatprep.subr.bf16.mxu1 %v4386_v2  ;;  %v6143_v2 = vld [vmem:[#allocation115_spill] sm:$0xff] }
 0x5e5   :  { %2508 = vmatpush1.bf16.msra.mxu1 %v4384_v59  ;;  %v6130_v59 = vld [vmem:[#allocation92_spill] sm:$0xff] }
 0x5e6   :  { %2509 = vmatprep.subr.bf16.mxu1 %v4412_v10  ;;  %v6145_v10 = vld [vmem:[#allocation119_spill] sm:$0xff] }
 0x5e9   :  { %2510 = vmatpush1.bf16.msra.mxu1 %v4410_v62  ;;  %v6144_v62 = vld [vmem:[#allocation120_spill] sm:$0xff] }
 0x5ea   :  { %2536 = vmatprep.subr.bf16.mxu1 %v4450_v35  ;;  %v6131_v35 = vld [vmem:[#allocation91_spill] sm:$0xff] }
 0x5ec   :  { %2528 = vmatmul.mubr.bf16.vlgmr.msra.gmra.mrb[8].mxu1 %v5418_v43 }
 0x5ed   :  { %2537 = vmatpush1.bf16.msra.mxu1 %v4442_v52  ;;  %2568 = vmatprep.mubr.bf16.mxu1 %v3684_v56  ;;  %v6146_v52 = vld [vmem:[#allocation124_spill] sm:$0xff] }
 0x5ee   :  { %2538 = vmatprep.subr.bf16.mxu1 %v4474_v31  ;;  %v6148_v31 = vld [vmem:[#allocation128_spill] sm:$0xff] }
 0x5f1   :  { %2539 = vmatpush1.bf16.msra.mxu1 %v4472_v41  ;;  %v6147_v41 = vld [vmem:[#allocation123_spill] sm:$0xff] }
 0x5f2   :  { %2540 = vmatprep.subr.bf16.mxu1 %v4498_v36  ;;  %v6150_v36 = vld [vmem:[#allocation132_spill] sm:$0xff] }
 0x5f5   :  { %2541 = vmatpush1.bf16.msra.mxu1 %v4496_v55  ;;  %v6149_v55 = vld [vmem:[#allocation127_spill] sm:$0xff] }
 0x5f6   :  { %2542 = vmatprep.subr.bf16.mxu1 %v4522_v20  ;;  %v6152_v20 = vld [vmem:[#allocation136_spill] sm:$0xff] }
 0x5f9   :  { %2543 = vmatpush1.bf16.msra.mxu1 %v4520_v48  ;;  %v6151_v48 = vld [vmem:[#allocation131_spill] sm:$0xff] }
 0x5fa   :  { %2544 = vmatprep.subr.bf16.mxu1 %v6130_v59  ;;  %v6170_v59 = vld [vmem:[#allocation18_spill] sm:$0xff] }
 0x5fd   :  { %2545 = vmatpush1.bf16.msra.mxu1 %v6131_v35  ;;  %v6171_v35 = vld [vmem:[#allocation19_spill] sm:$0xff] }
 0x5fe   :  { %2546 = vmatprep.subr.bf16.mxu1 %v6132_v63  ;;  %v6172_v63 = vld [vmem:[#allocation20_spill] sm:$0xff] }
 0x601   :  { %2547 = vmatpush1.bf16.msra.mxu1 %v6133_v5  ;;  %v6173_v5 = vld [vmem:[#allocation21_spill] sm:$0xff] }
 0x602   :  { %2548 = vmatprep.subr.bf16.mxu1 %v6134_v9  ;;  %v6174_v9 = vld [vmem:[#allocation22_spill] sm:$0xff] }
 0x605   :  { %2549 = vmatpush1.bf16.msra.mxu1 %v6135_v45  ;;  %v6175_v45 = vld [vmem:[#allocation23_spill] sm:$0xff] }
 0x606   :  { %2550 = vmatprep.subr.bf16.mxu1 %v6136_v29  ;;  %v6176_v29 = vld [vmem:[#allocation24_spill] sm:$0xff] }
 0x609   :  { %2551 = vmatpush1.bf16.msra.mxu1 %v6137_v39  ;;  %v6177_v39 = vld [vmem:[#allocation25_spill] sm:$0xff] }
 0x60a   :  { %2577 = vmatprep.subr.bf16.mxu1 %v6138_v60  ;;  %v6178_v60 = vld [vmem:[#allocation26_spill] sm:$0xff] }
 0x60c   :  { %2569 = vmatmul.mubr.bf16.vlgmr.msra.gmra.mrb[12].mxu1 %v5418_v43 }
 0x60d   :  { %2578 = vmatpush1.bf16.msra.mxu1 %v6139_v33  ;;  %2609 = vmatprep.mubr.bf16.mxu1 %v3684_v56  ;;  %v6179_v33 = vld [vmem:[#allocation27_spill] sm:$0xff] }
 0x60e   :  { %2579 = vmatprep.subr.bf16.mxu1 %v6140_v25  ;;  %v6180_v25 = vld [vmem:[#allocation28_spill] sm:$0xff] }
 0x611   :  { %2580 = vmatpush1.bf16.msra.mxu1 %v6141_v13  ;;  %v6181_v13 = vld [vmem:[#allocation29_spill] sm:$0xff] }
 0x612   :  { %2581 = vmatprep.subr.bf16.mxu1 %v6142_v21  ;;  %v6182_v21 = vld [vmem:[#allocation30_spill] sm:$0xff] }
 0x615   :  { %2582 = vmatpush1.bf16.msra.mxu1 %v6143_v2  ;;  %v6183_v2 = vld [vmem:[#allocation31_spill] sm:$0xff] }
 0x616   :  { %2583 = vmatprep.subr.bf16.mxu1 %v6144_v62  ;;  %v6184_v62 = vld [vmem:[#allocation32_spill] sm:$0xff] }
 0x619   :  { %2584 = vmatpush1.bf16.msra.mxu1 %v6145_v10  ;;  %v6185_v10 = vld [vmem:[#allocation33_spill] sm:$0xff] }
 0x61a   :  { %2585 = vmatprep.subr.bf16.mxu1 %v6146_v52  ;;  %v6186_v52 = vld [vmem:[#allocation34_spill] sm:$0xff] }
 0x61d   :  { %2586 = vmatpush1.bf16.msra.mxu1 %v6147_v41  ;;  %v6187_v41 = vld [vmem:[#allocation35_spill] sm:$0xff] }
 0x61e   :  { %2587 = vmatprep.subr.bf16.mxu1 %v6148_v31  ;;  %v6188_v31 = vld [vmem:[#allocation36_spill] sm:$0xff] }
 0x621   :  { %2588 = vmatpush1.bf16.msra.mxu1 %v6149_v55  ;;  %v6189_v55 = vld [vmem:[#allocation37_spill] sm:$0xff] }
 0x622   :  { %2589 = vmatprep.subr.bf16.mxu1 %v6150_v36  ;;  %v6190_v36 = vld [vmem:[#allocation38_spill] sm:$0xff] }
 0x625   :  { %2590 = vmatpush1.bf16.msra.mxu1 %v6151_v48  ;;  %v6191_v48 = vld [vmem:[#allocation39_spill] sm:$0xff] }
 0x626   :  { %2591 = vmatprep.subr.bf16.mxu1 %v6152_v20  ;;  %v6192_v20 = vld [vmem:[#allocation40_spill] sm:$0xff] }
 0x629   :  { %2592 = vmatpush1.bf16.msra.mxu1 %v6153_v1  ;;  %v6193_v1 = vld [vmem:[#allocation41_spill] sm:$0xff] }
 0x62a   :  { %2618 = vmatprep.subr.bf16.mxu1 %v6154_v7  ;;  %v6194_v7 = vld [vmem:[#allocation42_spill] sm:$0xff] }
 0x62c   :  { %2610 = vmatmul.mubr.bf16.vlgmr.msra.gmra.mrb[16].mxu1 %v5418_v43 }
 0x62d   :  { %2619 = vmatpush1.bf16.msra.mxu1 %v6155_v37  ;;  %2650 = vmatprep.mubr.bf16.mxu1 %v3684_v56  ;;  %v6195_v37 = vld [vmem:[#allocation43_spill] sm:$0xff] }
 0x62e   :  { %2620 = vmatprep.subr.bf16.mxu1 %v6156_v61  ;;  %v6196_v61 = vld [vmem:[#allocation44_spill] sm:$0xff] }
 0x631   :  { %2621 = vmatpush1.bf16.msra.mxu1 %v6157_v14  ;;  %v6197_v14 = vld [vmem:[#allocation45_spill] sm:$0xff] }
 0x632   :  { %2622 = vmatprep.subr.bf16.mxu1 %v6158_v54  ;;  %v6198_v54 = vld [vmem:[#allocation46_spill] sm:$0xff] }
 0x635   :  { %2623 = vmatpush1.bf16.msra.mxu1 %v6159_v38  ;;  %v6199_v38 = vld [vmem:[#allocation47_spill] sm:$0xff] }
 0x636   :  { %2624 = vmatprep.subr.bf16.mxu1 %v6160_v11  ;;  %v6200_v11 = vld [vmem:[#allocation48_spill] sm:$0xff] }
 0x639   :  { %2625 = vmatpush1.bf16.msra.mxu1 %v6161_v53  ;;  %v6201_v53 = vld [vmem:[#allocation49_spill] sm:$0xff] }
 0x63a   :  { %2626 = vmatprep.subr.bf16.mxu1 %v6162_v28  ;;  %v6202_v28 = vld [vmem:[#allocation50_spill] sm:$0xff] }
 0x63d   :  { %2627 = vmatpush1.bf16.msra.mxu1 %v6163_v17  ;;  %v6203_v17 = vld [vmem:[#allocation51_spill] sm:$0xff] }
 0x63e   :  { %2628 = vmatprep.subr.bf16.mxu1 %v6164_v34  ;;  %v6204_v34 = vld [vmem:[#allocation52_spill] sm:$0xff] }
 0x641   :  { %2629 = vmatpush1.bf16.msra.mxu1 %v6165_v22  ;;  %v6205_v22 = vld [vmem:[#allocation53_spill] sm:$0xff] }
 0x642   :  { %2630 = vmatprep.subr.bf16.mxu1 %v6166_v12  ;;  %v6206_v12 = vld [vmem:[#allocation54_spill] sm:$0xff] }
 0x645   :  { %2631 = vmatpush1.bf16.msra.mxu1 %v6167_v23  ;;  %v6207_v23 = vld [vmem:[#allocation55_spill] sm:$0xff] }
 0x646   :  { %2632 = vmatprep.subr.bf16.mxu1 %v6168_v19  ;;  %v6208_v19 = vld [vmem:[#allocation56_spill] sm:$0xff] }
 0x649   :  { %2633 = vmatpush1.bf16.msra.mxu1 %v6169_v57  ;;  %v6209_v57 = vld [vmem:[#allocation57_spill] sm:$0xff] }
 0x64a   :  { %2659 = vmatprep.subr.bf16.mxu1 %v6170_v59  ;;  %v6210_v59 = vld [vmem:[#allocation58_spill] sm:$0xff] }
 0x64c   :  { %2651 = vmatmul.mubr.bf16.vlgmr.msra.gmra.mrb[20].mxu1 %v5418_v43 }
 0x64d   :  { %2660 = vmatpush1.bf16.msra.mxu1 %v6171_v35  ;;  %2691 = vmatprep.mubr.bf16.mxu1 %v3684_v56  ;;  %v6211_v35 = vld [vmem:[#allocation59_spill] sm:$0xff] }
 0x64e   :  { %2661 = vmatprep.subr.bf16.mxu1 %v6172_v63  ;;  %v6212_v63 = vld [vmem:[#allocation60_spill] sm:$0xff] }
 0x651   :  { %2662 = vmatpush1.bf16.msra.mxu1 %v6173_v5 }
 0x652   :  { %2663 = vmatprep.subr.bf16.mxu1 %v6174_v9 }
 0x655   :  { %2664 = vmatpush1.bf16.msra.mxu1 %v6175_v45 }
 0x656   :  { %2665 = vmatprep.subr.bf16.mxu1 %v6176_v29  ;;  %v6213_v29 = vld [vmem:[#allocation61_spill] sm:$0xff] }
 0x659   :  { %2666 = vmatpush1.bf16.msra.mxu1 %v6177_v39 }
 0x65a   :  { %2667 = vmatprep.subr.bf16.mxu1 %v6178_v60 }
 0x65d   :  { %2668 = vmatpush1.bf16.msra.mxu1 %v6179_v33  ;;  %v6214_v33 = vld [vmem:[#allocation62_spill] sm:$0xff] }
 0x65e   :  { %2669 = vmatprep.subr.bf16.mxu1 %v6180_v25  ;;  %v6215_v25 = vld [vmem:[#allocation63_spill] sm:$0xff] }
 0x661   :  { %2670 = vmatpush1.bf16.msra.mxu1 %v6181_v13  ;;  %v6216_v13 = vld [vmem:[#allocation64_spill] sm:$0xff] }
 0x662   :  { %2671 = vmatprep.subr.bf16.mxu1 %v6182_v21  ;;  %v6217_v21 = vld [vmem:[#allocation65_spill] sm:$0xff] }
 0x665   :  { %2672 = vmatpush1.bf16.msra.mxu1 %v6183_v2  ;;  %v6218_v2 = vld [vmem:[#allocation66_spill] sm:$0xff] }
 0x666   :  { %2673 = vmatprep.subr.bf16.mxu1 %v6184_v62  ;;  %v6219_v62 = vld [vmem:[#allocation67_spill] sm:$0xff] }
 0x669   :  { %2674 = vmatpush1.bf16.msra.mxu1 %v6185_v10  ;;  %v6220_v10 = vld [vmem:[#allocation68_spill] sm:$0xff] }
 0x66a   :  { %2700 = vmatprep.subr.bf16.mxu1 %v6186_v52  ;;  %v6221_v52 = vld [vmem:[#allocation69_spill] sm:$0xff] }
 0x66c   :  { %2692 = vmatmul.mubr.bf16.vlgmr.msra.gmra.mrb[24].mxu1 %v5418_v43 }
 0x66d   :  { %2701 = vmatpush1.bf16.msra.mxu1 %v6187_v41  ;;  %2732 = vmatprep.mubr.bf16.mxu1 %v3684_v56  ;;  %v6222_v41 = vld [vmem:[#allocation70_spill] sm:$0xff] }
 0x66e   :  { %2702 = vmatprep.subr.bf16.mxu1 %v6188_v31  ;;  %v6223_v31 = vld [vmem:[#allocation71_spill] sm:$0xff] }
 0x671   :  { %2703 = vmatpush1.bf16.msra.mxu1 %v6189_v55  ;;  %v6224_v55 = vld [vmem:[#allocation72_spill] sm:$0xff] }
 0x672   :  { %2704 = vmatprep.subr.bf16.mxu1 %v6190_v36  ;;  %v6225_v36 = vld [vmem:[#allocation73_spill] sm:$0xff] }
 0x675   :  { %2705 = vmatpush1.bf16.msra.mxu1 %v6191_v48  ;;  %v6226_v48 = vld [vmem:[#allocation74_spill] sm:$0xff] }
 0x676   :  { %2706 = vmatprep.subr.bf16.mxu1 %v6192_v20  ;;  %v6227_v20 = vld [vmem:[#allocation75_spill] sm:$0xff] }
 0x679   :  { %2707 = vmatpush1.bf16.msra.mxu1 %v6193_v1  ;;  %v6228_v1 = vld [vmem:[#allocation76_spill] sm:$0xff] }
 0x67a   :  { %2708 = vmatprep.subr.bf16.mxu1 %v6194_v7 }
 0x67d   :  { %2709 = vmatpush1.bf16.msra.mxu1 %v6195_v37 }
 0x67e   :  { %2710 = vmatprep.subr.bf16.mxu1 %v6196_v61 }
 0x681   :  { %2711 = vmatpush1.bf16.msra.mxu1 %v6197_v14 }
 0x682   :  { %2712 = vmatprep.subr.bf16.mxu1 %v6198_v54  ;;  %v6229_v54 = vld [vmem:[#allocation77_spill] sm:$0xff] }
 0x685   :  { %2713 = vmatpush1.bf16.msra.mxu1 %v6199_v38 }
 0x686   :  { %2714 = vmatprep.subr.bf16.mxu1 %v6200_v11  ;;  %v6230_v11 = vld [vmem:[#allocation78_spill] sm:$0xff] }
 0x689   :  { %2715 = vmatpush1.bf16.msra.mxu1 %v6201_v53  ;;  %v6231_v53 = vld [vmem:[#allocation79_spill] sm:$0xff] }
 0x68a   :  { %2741 = vmatprep.subr.bf16.mxu1 %v6202_v28  ;;  %v6232_v28 = vld [vmem:[#allocation80_spill] sm:$0xff] }
 0x68c   :  { %2733 = vmatmul.mubr.bf16.vlgmr.msra.gmra.mrb[28].mxu1 %v5418_v43 }
 0x68d   :  { %2742 = vmatpush1.bf16.msra.mxu1 %v6203_v17  ;;  %2773 = vmatprep.mubr.bf16.mxu1 %v3684_v56  ;;  %v6233_v17 = vld [vmem:[#allocation81_spill] sm:$0xff] }
 0x68e   :  { %2743 = vmatprep.subr.bf16.mxu1 %v6204_v34  ;;  %v6234_v34 = vld [vmem:[#allocation82_spill] sm:$0xff] }
 0x691   :  { %2744 = vmatpush1.bf16.msra.mxu1 %v6205_v22  ;;  %v6235_v22 = vld [vmem:[#allocation83_spill] sm:$0xff] }
 0x692   :  { %2745 = vmatprep.subr.bf16.mxu1 %v6206_v12  ;;  %v6236_v12 = vld [vmem:[#allocation84_spill] sm:$0xff] }
 0x695   :  { %2746 = vmatpush1.bf16.msra.mxu1 %v6207_v23  ;;  %v6237_v23 = vld [vmem:[#allocation85_spill] sm:$0xff] }
 0x696   :  { %2747 = vmatprep.subr.bf16.mxu1 %v6208_v19  ;;  %v6238_v19 = vld [vmem:[#allocation86_spill] sm:$0xff] }
 0x699   :  { %2748 = vmatpush1.bf16.msra.mxu1 %v6209_v57  ;;  %v6239_v57 = vld [vmem:[#allocation87_spill] sm:$0xff] }
 0x69a   :  { %2749 = vmatprep.subr.bf16.mxu1 %v6210_v59  ;;  %v6240_v59 = vld [vmem:[#allocation88_spill] sm:$0xff] }
 0x69d   :  { %2750 = vmatpush1.bf16.msra.mxu1 %v6211_v35  ;;  %v6241_v35 = vld [vmem:[#allocation89_spill] sm:$0xff] }
 0x69e   :  { %2751 = vmatprep.subr.bf16.mxu1 %v6212_v63  ;;  %v6242_v63 = vld [vmem:[#allocation90_spill] sm:$0xff] }
 0x69f   :  { %v2488_v5 = vpop.f32.mrb[4].mxu1 }
 0x6a0   :  { %v2490_v9 = vpop.f32.mrb[5].mxu1 }
 0x6a1   :  { %v3564_v45 = vpack.c.bf16 %v2490_v9, %v2488_v5  ;;  %2752 = vmatpush1.bf16.msra.mxu1 %v6213_v29  ;;  %v2492_v39 = vpop.f32.mrb[6].mxu1  ;;  %v6243_v5 = vld [vmem:[#allocation93_spill] sm:$0xff]  ;;  %v6244_v9 = vld [vmem:[#allocation94_spill] sm:$0xff] }
 0x6a2   :  { %v2493_v60 = vpop.f32.mrb[7].mxu1  ;;  %2753 = vmatprep.subr.bf16.mxu1 %v6214_v33  ;;  %v6245_v33 = vld [vmem:[#allocation97_spill] sm:$0xff] }
 0x6a3   :  { %3238 = vst [vmem:[%s5741_s3] sm:$0xff] %v3564_v45 }
 0x6a5   :  { %2754 = vmatpush1.bf16.msra.mxu1 %v6215_v25 }
 0x6a6   :  { %2755 = vmatprep.subr.bf16.mxu1 %v6216_v13  ;;  %v6246_v13 = vld [vmem:[#allocation98_spill] sm:$0xff] }
 0x6a9   :  { %2756 = vmatpush1.bf16.msra.mxu1 %v6217_v21  ;;  %v6247_v21 = vld [vmem:[#allocation101_spill] sm:$0xff] }
 0x6aa   :  { %2782 = vmatprep.subr.bf16.mxu1 %v6218_v2  ;;  %v6248_v2 = vld [vmem:[#allocation102_spill] sm:$0xff] }
 0x6ac   :  { %2774 = vmatmul.mubr.bf16.vlgmr.msra.gmra.mrb[32].mxu1 %v5418_v43 }
 0x6ad   :  { %2783 = vmatpush1.bf16.msra.mxu1 %v6219_v62  ;;  %2814 = vmatprep.mubr.bf16.mxu1 %v3684_v56  ;;  %v6249_v62 = vld [vmem:[#allocation105_spill] sm:$0xff] }
 0x6ae   :  { %2784 = vmatprep.subr.bf16.mxu1 %v6220_v10  ;;  %v6250_v10 = vld [vmem:[#allocation106_spill] sm:$0xff] }
 0x6b1   :  { %2785 = vmatpush1.bf16.msra.mxu1 %v6221_v52  ;;  %v6251_v52 = vld [vmem:[#allocation109_spill] sm:$0xff] }
 0x6b2   :  { %2786 = vmatprep.subr.bf16.mxu1 %v6222_v41  ;;  %v6252_v41 = vld [vmem:[#allocation110_spill] sm:$0xff] }
 0x6b5   :  { %2787 = vmatpush1.bf16.msra.mxu1 %v6223_v31  ;;  %v6253_v31 = vld [vmem:[#allocation113_spill] sm:$0xff] }
 0x6b6   :  { %2788 = vmatprep.subr.bf16.mxu1 %v6224_v55  ;;  %v6254_v55 = vld [vmem:[#allocation114_spill] sm:$0xff] }
 0x6b9   :  { %2789 = vmatpush1.bf16.msra.mxu1 %v6225_v36  ;;  %v6255_v36 = vld [vmem:[#allocation117_spill] sm:$0xff] }
 0x6ba   :  { %2790 = vmatprep.subr.bf16.mxu1 %v6226_v48  ;;  %v6256_v48 = vld [vmem:[#allocation118_spill] sm:$0xff] }
 0x6bd   :  { %2791 = vmatpush1.bf16.msra.mxu1 %v6227_v20  ;;  %v6257_v20 = vld [vmem:[#allocation121_spill] sm:$0xff] }
 0x6be   :  { %2792 = vmatprep.subr.bf16.mxu1 %v6228_v1  ;;  %v6258_v1 = vld [vmem:[#allocation122_spill] sm:$0xff] }
 0x6bf   :  { %v2529_v7 = vpop.f32.mrb[8].mxu1 }
 0x6c0   :  { %v2531_v37 = vpop.f32.mrb[9].mxu1 }
 0x6c1   :  { %v3565_v61 = vpack.c.bf16 %v2531_v37, %v2529_v7  ;;  %v2533_v14 = vpop.f32.mrb[10].mxu1  ;;  %2793 = vmatpush1.bf16.msra.mxu1 %v6229_v54  ;;  %v6259_v7 = vld [vmem:[#allocation125_spill] sm:$0xff]  ;;  %v6260_v37 = vld [vmem:[#allocation126_spill] sm:$0xff] }
 0x6c2   :  { %v2534_v38 = vpop.f32.mrb[11].mxu1  ;;  %2794 = vmatprep.subr.bf16.mxu1 %v6230_v11  ;;  %v6261_v11 = vld [vmem:[#allocation129_spill] sm:$0xff] }
 0x6c3   :  { %3239 = vst [vmem:[%s5741_s3 + $0x8] sm:$0xff] %v3565_v61 }
 0x6c5   :  { %2795 = vmatpush1.bf16.msra.mxu1 %v6231_v53 }
 0x6c6   :  { %2796 = vmatprep.subr.bf16.mxu1 %v6232_v28  ;;  %v6262_v28 = vld [vmem:[#allocation130_spill] sm:$0xff] }
 0x6c9   :  { %2797 = vmatpush1.bf16.msra.mxu1 %v6233_v17  ;;  %v6263_v17 = vld [vmem:[#allocation133_spill] sm:$0xff] }
 0x6ca   :  { %2823 = vmatprep.subr.bf16.mxu1 %v6234_v34  ;;  %v6264_v34 = vld [vmem:[#allocation134_spill] sm:$0xff] }
 0x6cc   :  { %2815 = vmatmul.mubr.bf16.vlgmr.msra.gmra.mrb[36].mxu1 %v5418_v43 }
 0x6cd   :  { %2824 = vmatpush1.bf16.msra.mxu1 %v6235_v22  ;;  %2855 = vmatprep.mubr.bf16.mxu1 %v3684_v56  ;;  %v6265_v22 = vld [vmem:[#allocation137_spill] sm:$0xff] }
 0x6ce   :  { %2825 = vmatprep.subr.bf16.mxu1 %v6236_v12  ;;  %v6266_v12 = vld [vmem:[#allocation138_spill] sm:$0xff] }
 0x6d1   :  { %2826 = vmatpush1.bf16.msra.mxu1 %v6237_v23 }
 0x6d2   :  { %2827 = vmatprep.subr.bf16.mxu1 %v6238_v19 }
 0x6d5   :  { %2828 = vmatpush1.bf16.msra.mxu1 %v6239_v57 }
 0x6d6   :  { %2829 = vmatprep.subr.bf16.mxu1 %v6240_v59 }
 0x6d9   :  { %2830 = vmatpush1.bf16.msra.mxu1 %v6241_v35 }
 0x6da   :  { %2831 = vmatprep.subr.bf16.mxu1 %v6242_v63  ;;  %v6278_v63 = vld [vmem:[#allocation150_spill] sm:$0xff] }
 0x6dd   :  { %2832 = vmatpush1.bf16.msra.mxu1 %v6243_v5 }
 0x6de   :  { %2833 = vmatprep.subr.bf16.mxu1 %v6244_v9  ;;  %v6279_v9 = vld [vmem:[#allocation151_spill] sm:$0xff] }
 0x6df   :  { %v2570_v45 = vpop.f32.mrb[12].mxu1 }
 0x6e0   :  { %v2572_v29 = vpop.f32.mrb[13].mxu1 }
 0x6e1   :  { %v3566_v39 = vpack.c.bf16 %v2572_v29, %v2570_v45  ;;  %v2574_v60 = vpop.f32.mrb[14].mxu1  ;;  %2834 = vmatpush1.bf16.msra.mxu1 %v6245_v33  ;;  %v6280_v45 = vld [vmem:[#allocation152_spill] sm:$0xff]  ;;  %v6281_v29 = vld [vmem:[#allocation153_spill] sm:$0xff] }
 0x6e2   :  { %v2575_v25 = vpop.f32.mrb[15].mxu1  ;;  %2835 = vmatprep.subr.bf16.mxu1 %v6246_v13  ;;  %v6283_v60 = vld [vmem:[#allocation155_spill] sm:$0xff]  ;;  %v6284_v33 = vld [vmem:[#allocation156_spill] sm:$0xff]  ;;  %v6286_v13 = vld [vmem:[#allocation158_spill] sm:$0xff] }
 0x6e3   :  { %3240 = vst [vmem:[%s5741_s3 + $0x10] sm:$0xff] %v3566_v39  ;;  %v6282_v39 = vld [vmem:[#allocation154_spill] sm:$0xff]  ;;  %v6285_v25 = vld [vmem:[#allocation157_spill] sm:$0xff] }
 0x6e5   :  { %2836 = vmatpush1.bf16.msra.mxu1 %v6247_v21  ;;  %v6287_v21 = vld [vmem:[#allocation159_spill] sm:$0xff] }
 0x6e6   :  { %2837 = vmatprep.subr.bf16.mxu1 %v6248_v2  ;;  %v6288_v2 = vld [vmem:[#allocation160_spill] sm:$0xff] }
 0x6e9   :  { %2838 = vmatpush1.bf16.msra.mxu1 %v6249_v62  ;;  %v6289_v62 = vld [vmem:[#allocation161_spill] sm:$0xff] }
 0x6ea   :  { %2864 = vmatprep.subr.bf16.mxu1 %v6250_v10  ;;  %v6290_v10 = vld [vmem:[#allocation162_spill] sm:$0xff] }
 0x6ec   :  { %2856 = vmatmul.mubr.bf16.vlgmr.msra.gmra.mrb[40].mxu1 %v5418_v43 }
 0x6ed   :  { %2865 = vmatpush1.bf16.msra.mxu1 %v6251_v52  ;;  %2896 = vmatprep.mubr.bf16.mxu1 %v3684_v56  ;;  %v6291_v52 = vld [vmem:[#allocation163_spill] sm:$0xff] }
 0x6ee   :  { %2866 = vmatprep.subr.bf16.mxu1 %v6252_v41  ;;  %v6292_v41 = vld [vmem:[#allocation164_spill] sm:$0xff] }
 0x6f1   :  { %2867 = vmatpush1.bf16.msra.mxu1 %v6253_v31  ;;  %v6293_v31 = vld [vmem:[#allocation165_spill] sm:$0xff] }
 0x6f2   :  { %2868 = vmatprep.subr.bf16.mxu1 %v6254_v55 }
 0x6f5   :  { %2869 = vmatpush1.bf16.msra.mxu1 %v6255_v36 }
 0x6f6   :  { %2870 = vmatprep.subr.bf16.mxu1 %v6256_v48 }
 0x6f9   :  { %2871 = vmatpush1.bf16.msra.mxu1 %v6257_v20 }
 0x6fa   :  { %2872 = vmatprep.subr.bf16.mxu1 %v6258_v1  ;;  %v6294_v1 = vld [vmem:[#allocation166_spill] sm:$0xff] }
 0x6fd   :  { %2873 = vmatpush1.bf16.msra.mxu1 %v6259_v7 }
 0x6fe   :  { %2874 = vmatprep.subr.bf16.mxu1 %v6260_v37  ;;  %v6295_v37 = vld [vmem:[#allocation167_spill] sm:$0xff] }
 0x6ff   :  { %v2611_v61 = vpop.f32.mrb[16].mxu1 }
 0x700   :  { %v2613_v14 = vpop.f32.mrb[17].mxu1 }
 0x701   :  { %v3567_v54 = vpack.c.bf16 %v2613_v14, %v2611_v61  ;;  %v2615_v38 = vpop.f32.mrb[18].mxu1  ;;  %2875 = vmatpush1.bf16.msra.mxu1 %v6261_v11  ;;  %v6296_v61 = vld [vmem:[#allocation168_spill] sm:$0xff]  ;;  %v6297_v14 = vld [vmem:[#allocation169_spill] sm:$0xff] }
 0x702   :  { %v2616_v53 = vpop.f32.mrb[19].mxu1  ;;  %2876 = vmatprep.subr.bf16.mxu1 %v6262_v28  ;;  %v6299_v38 = vld [vmem:[#allocation171_spill] sm:$0xff]  ;;  %v6300_v11 = vld [vmem:[#allocation172_spill] sm:$0xff]  ;;  %v6302_v28 = vld [vmem:[#allocation174_spill] sm:$0xff] }
 0x703   :  { %3241 = vst [vmem:[%s5741_s3 + $0x18] sm:$0xff] %v3567_v54  ;;  %v6298_v54 = vld [vmem:[#allocation170_spill] sm:$0xff]  ;;  %v6301_v53 = vld [vmem:[#allocation173_spill] sm:$0xff] }
 0x705   :  { %2877 = vmatpush1.bf16.msra.mxu1 %v6263_v17 }
 0x706   :  { %2878 = vmatprep.subr.bf16.mxu1 %v6264_v34 }
 0x709   :  { %2879 = vmatpush1.bf16.msra.mxu1 %v6265_v22 }
 0x70a   :  { %2905 = vmatprep.subr.bf16.mxu1 %v6266_v12 }
 0x70c   :  { %2897 = vmatmul.mubr.bf16.vlgmr.msra.gmra.mrb[44].mxu1 %v5418_v43 }
 0x70d   :  { %2906 = vmatpush1.bf16.msra.mxu1 %v4861_v15  ;;  %2937 = vmatprep.mubr.bf16.mxu1 %v3684_v56 }
 0x70e   :  { %2907 = vmatprep.subr.bf16.mxu1 %v4868_v47 }
 0x711   :  { %2908 = vmatpush1.bf16.msra.mxu1 %v4886_v3 }
 0x712   :  { %2909 = vmatprep.subr.bf16.mxu1 %v4889_v50  ;;  %v6267_v50 = vld [vmem:[#allocation139_spill] sm:$0xff] }
 0x715   :  { %2910 = vmatpush1.bf16.msra.mxu1 %v4904_v24  ;;  %v6268_v24 = vld [vmem:[#allocation140_spill] sm:$0xff] }
 0x716   :  { %2911 = vmatprep.subr.bf16.mxu1 %v4906_v4  ;;  %v6269_v4 = vld [vmem:[#allocation141_spill] sm:$0xff] }
 0x719   :  { %2912 = vmatpush1.bf16.msra.mxu1 %v4922_v49  ;;  %v6270_v49 = vld [vmem:[#allocation142_spill] sm:$0xff] }
 0x71a   :  { %2913 = vmatprep.subr.bf16.mxu1 %v4924_v8  ;;  %v6271_v8 = vld [vmem:[#allocation143_spill] sm:$0xff] }
 0x71d   :  { %2914 = vmatpush1.bf16.msra.mxu1 %v4938_v32  ;;  %v6272_v32 = vld [vmem:[#allocation144_spill] sm:$0xff] }
 0x71e   :  { %2915 = vmatprep.subr.bf16.mxu1 %v4940_v18  ;;  %v6273_v18 = vld [vmem:[#allocation145_spill] sm:$0xff] }
 0x71f   :  { %v2652_v15 = vpop.f32.mrb[20].mxu1 }
 0x720   :  { %v2654_v23 = vpop.f32.mrb[21].mxu1 }
 0x721   :  { %v3568_v19 = vpack.c.bf16 %v2654_v23, %v2652_v15  ;;  %v2656_v47 = vpop.f32.mrb[22].mxu1  ;;  %2916 = vmatpush1.bf16.msra.mxu1 %v4950_v58  ;;  %v6274_v58 = vld [vmem:[#allocation146_spill] sm:$0xff]  ;;  %v6303_v15 = vld [vmem:[#allocation175_spill] sm:$0xff] }
 0x722   :  { %v2657_v3 = vpop.f32.mrb[23].mxu1  ;;  %2917 = vmatprep.subr.bf16.mxu1 %v4952_v44  ;;  %v6275_v44 = vld [vmem:[#allocation147_spill] sm:$0xff]  ;;  %v6310_v23 = vld [vmem:[#allocation182_spill] sm:$0xff]  ;;  %v6312_v47 = vld [vmem:[#allocation184_spill] sm:$0xff] }
 0x723   :  { %3242 = vst [vmem:[%s5741_s3 + $0x20] sm:$0xff] %v3568_v19  ;;  %v6311_v19 = vld [vmem:[#allocation183_spill] sm:$0xff]  ;;  %v6313_v3 = vld [vmem:[#allocation185_spill] sm:$0xff] }
 0x725   :  { %2918 = vmatpush1.bf16.msra.mxu1 %v4962_v40  ;;  %v6276_v40 = vld [vmem:[#allocation148_spill] sm:$0xff] }
 0x726   :  { %2919 = vmatprep.subr.bf16.mxu1 %v4964_v27  ;;  %v6277_v27 = vld [vmem:[#allocation149_spill] sm:$0xff] }
 0x729   :  { %2920 = vmatpush1.bf16.msra.mxu1 %v4974_v51 }
 0x72a   :  { %2946 = vmatprep.subr.bf16.mxu1 %v6267_v50  ;;  %v6314_v50 = vld [vmem:[#allocation186_spill] sm:$0xff] }
 0x72c   :  { %2938 = vmatmul.mubr.bf16.vlgmr.msra.gmra.mrb[48].mxu1 %v5418_v43 }
 0x72d   :  { %2947 = vmatpush1.bf16.msra.mxu1 %v6268_v24  ;;  %2978 = vmatprep.mubr.bf16.mxu1 %v3684_v56  ;;  %v6315_v24 = vld [vmem:[#allocation187_spill] sm:$0xff] }
 0x72e   :  { %2948 = vmatprep.subr.bf16.mxu1 %v6269_v4  ;;  %v6316_v4 = vld [vmem:[#allocation188_spill] sm:$0xff] }
 0x731   :  { %2949 = vmatpush1.bf16.msra.mxu1 %v6270_v49  ;;  %v6317_v49 = vld [vmem:[#allocation189_spill] sm:$0xff] }
 0x732   :  { %2950 = vmatprep.subr.bf16.mxu1 %v6271_v8  ;;  %v6318_v8 = vld [vmem:[#allocation190_spill] sm:$0xff] }
 0x735   :  { %2951 = vmatpush1.bf16.msra.mxu1 %v6272_v32 }
 0x736   :  { %2952 = vmatprep.subr.bf16.mxu1 %v6273_v18 }
 0x739   :  { %2953 = vmatpush1.bf16.msra.mxu1 %v6274_v58 }
 0x73a   :  { %2954 = vmatprep.subr.bf16.mxu1 %v6275_v44  ;;  %v6319_v44 = vld [vmem:[#allocation191_spill] sm:$0xff] }
 0x73d   :  { %2955 = vmatpush1.bf16.msra.mxu1 %v6276_v40 }
 0x73e   :  { %2956 = vmatprep.subr.bf16.mxu1 %v6277_v27  ;;  %v6320_v27 = vld [vmem:[#allocation192_spill] sm:$0xff] }
 0x73f   :  { %v2693_v51 = vpop.f32.mrb[24].mxu1 }
 0x740   :  { %v2695_v57 = vpop.f32.mrb[25].mxu1 }
 0x741   :  { %v3569_v59 = vpack.c.bf16 %v2695_v57, %v2693_v51  ;;  %v2697_v35 = vpop.f32.mrb[26].mxu1  ;;  %2957 = vmatpush1.bf16.msra.mxu1 %v6278_v63  ;;  %v6321_v51 = vld [vmem:[#allocation193_spill] sm:$0xff]  ;;  %v6322_v57 = vld [vmem:[#allocation194_spill] sm:$0xff] }
 0x742   :  { %v2698_v5 = vpop.f32.mrb[27].mxu1  ;;  %2958 = vmatprep.subr.bf16.mxu1 %v6279_v9 }
 0x743   :  { %3243 = vst [vmem:[%s5741_s3 + $0x28] sm:$0xff] %v3569_v59  ;;  %v6323_v59 = vld [vmem:[#allocation195_spill] sm:$0xff] }
 0x745   :  { %2959 = vmatpush1.bf16.msra.mxu1 %v6280_v45 }
 0x746   :  { %2960 = vmatprep.subr.bf16.mxu1 %v6281_v29 }
 0x749   :  { %2961 = vmatpush1.bf16.msra.mxu1 %v6282_v39 }
 0x74a   :  { %2987 = vmatprep.subr.bf16.mxu1 %v6283_v60 }
 0x74c   :  { %2979 = vmatmul.mubr.bf16.vlgmr.msra.gmra.mrb[52].mxu1 %v5418_v43 }
 0x74d   :  { %2988 = vmatpush1.bf16.msra.mxu1 %v6284_v33  ;;  %3019 = vmatprep.mubr.bf16.mxu1 %v3684_v56 }
 0x74e   :  { %2989 = vmatprep.subr.bf16.mxu1 %v6285_v25 }
 0x751   :  { %2990 = vmatpush1.bf16.msra.mxu1 %v6286_v13 }
 0x752   :  { %2991 = vmatprep.subr.bf16.mxu1 %v6287_v21 }
 0x755   :  { %2992 = vmatpush1.bf16.msra.mxu1 %v6288_v2 }
 0x756   :  { %2993 = vmatprep.subr.bf16.mxu1 %v6289_v62 }
 0x759   :  { %2994 = vmatpush1.bf16.msra.mxu1 %v6290_v10 }
 0x75a   :  { %2995 = vmatprep.subr.bf16.mxu1 %v6291_v52 }
 0x75d   :  { %2996 = vmatpush1.bf16.msra.mxu1 %v6292_v41 }
 0x75e   :  { %2997 = vmatprep.subr.bf16.mxu1 %v6293_v31 }
 0x75f   :  { %v2734_v55 = vpop.f32.mrb[28].mxu1 }
 0x760   :  { %v2736_v36 = vpop.f32.mrb[29].mxu1 }
 0x761   :  { %v3570_v48 = vpack.c.bf16 %v2736_v36, %v2734_v55  ;;  %v2738_v20 = vpop.f32.mrb[30].mxu1  ;;  %2998 = vmatpush1.bf16.msra.mxu1 %v6294_v1 }
 0x762   :  { %v2739_v7 = vpop.f32.mrb[31].mxu1  ;;  %2999 = vmatprep.subr.bf16.mxu1 %v6295_v37 }
 0x763   :  { %3244 = vst [vmem:[%s5741_s3 + $0x30] sm:$0xff] %v3570_v48 }
 0x765   :  { %3000 = vmatpush1.bf16.msra.mxu1 %v6296_v61 }
 0x766   :  { %3001 = vmatprep.subr.bf16.mxu1 %v6297_v14 }
 0x769   :  { %3002 = vmatpush1.bf16.msra.mxu1 %v6298_v54 }
 0x76a   :  { %3028 = vmatprep.subr.bf16.mxu1 %v6299_v38 }
 0x76c   :  { %3020 = vmatmul.mubr.bf16.vlgmr.msra.gmra.mrb[56].mxu1 %v5418_v43 }
 0x76d   :  { %3029 = vmatpush1.bf16.msra.mxu1 %v6300_v11  ;;  %3060 = vmatprep.mubr.bf16.mxu1 %v3684_v56 }
 0x76e   :  { %3030 = vmatprep.subr.bf16.mxu1 %v6301_v53 }
 0x771   :  { %3031 = vmatpush1.bf16.msra.mxu1 %v5226_v30 }
 0x772   :  { %3032 = vmatprep.subr.bf16.mxu1 %v5228_v16  ;;  %v6304_v16 = vld [vmem:[#allocation176_spill] sm:$0xff] }
 0x775   :  { %3033 = vmatpush1.bf16.msra.mxu1 %v5242_v46  ;;  %v6305_v46 = vld [vmem:[#allocation177_spill] sm:$0xff] }
 0x776   :  { %3034 = vmatprep.subr.bf16.mxu1 %v6302_v28 }
 0x779   :  { %3035 = vmatpush1.bf16.msra.mxu1 %v5264_v6  ;;  %v6306_v6 = vld [vmem:[#allocation178_spill] sm:$0xff] }
 0x77a   :  { %3036 = vmatprep.subr.bf16.mxu1 %v5267_v26  ;;  %v6307_v26 = vld [vmem:[#allocation179_spill] sm:$0xff] }
 0x77d   :  { %3037 = vmatpush1.bf16.msra.mxu1 %v5278_v0  ;;  %v6308_v0 = vld [vmem:[#allocation180_spill] sm:$0xff] }
 0x77e   :  { %3038 = vmatprep.subr.bf16.mxu1 %v5280_v42  ;;  %v6309_v42 = vld [vmem:[#allocation181_spill] sm:$0xff] }
 0x77f   :  { %v2775_v17 = vpop.f32.mrb[32].mxu1 }
 0x780   :  { %v2777_v34 = vpop.f32.mrb[33].mxu1 }
 0x781   :  { %v3571_v22 = vpack.c.bf16 %v2777_v34, %v2775_v17  ;;  %v2779_v12 = vpop.f32.mrb[34].mxu1  ;;  %3039 = vmatpush1.bf16.msra.mxu1 %v6303_v15 }
 0x782   :  { %v2780_v30 = vpop.f32.mrb[35].mxu1  ;;  %3040 = vmatprep.subr.bf16.mxu1 %v6304_v16 }
 0x783   :  { %3245 = vst [vmem:[%s5741_s3 + $0x38] sm:$0xff] %v3571_v22 }
 0x785   :  { %3041 = vmatpush1.bf16.msra.mxu1 %v6305_v46 }
 0x786   :  { %3042 = vmatprep.subr.bf16.mxu1 %v6306_v6 }
 0x789   :  { %3043 = vmatpush1.bf16.msra.mxu1 %v6307_v26 }
 0x78a   :  { %3069 = vmatprep.subr.bf16.mxu1 %v6308_v0 }
 0x78c   :  { %3061 = vmatmul.mubr.bf16.vlgmr.msra.gmra.mrb[60].mxu1 %v5418_v43 }
 0x78d   :  { %3070 = vmatpush1.bf16.msra.mxu1 %v6309_v42  ;;  %3101 = vmatprep.mubr.bf16.mxu1 %v3684_v56 }
 0x78e   :  { %3071 = vmatprep.subr.bf16.mxu1 %v6310_v23 }
 0x791   :  { %3072 = vmatpush1.bf16.msra.mxu1 %v6311_v19 }
 0x792   :  { %3073 = vmatprep.subr.bf16.mxu1 %v6312_v47 }
 0x795   :  { %3074 = vmatpush1.bf16.msra.mxu1 %v6313_v3 }
 0x796   :  { %3075 = vmatprep.subr.bf16.mxu1 %v6314_v50 }
 0x799   :  { %3076 = vmatpush1.bf16.msra.mxu1 %v6315_v24 }
 0x79a   :  { %3077 = vmatprep.subr.bf16.mxu1 %v6316_v4 }
 0x79d   :  { %3078 = vmatpush1.bf16.msra.mxu1 %v6317_v49 }
 0x79e   :  { %3079 = vmatprep.subr.bf16.mxu1 %v6318_v8 }
 0x79f   :  { %v2816_v32 = vpop.f32.mrb[36].mxu1 }
 0x7a0   :  { %v2818_v56 = vpop.f32.mrb[37].mxu1 }
 0x7a1   :  { %v3572_v18 = vpack.c.bf16 %v2818_v56, %v2816_v32  ;;  %v2820_v58 = vpop.f32.mrb[38].mxu1  ;;  %3080 = vmatpush1.bf16.msra.mxu1 %v6319_v44 }
 0x7a2   :  { %v2821_v40 = vpop.f32.mrb[39].mxu1  ;;  %3081 = vmatprep.subr.bf16.mxu1 %v6320_v27 }
 0x7a3   :  { %3246 = vst [vmem:[%s5741_s3 + $0x40] sm:$0xff] %v3572_v18 }
 0x7a5   :  { %3082 = vmatpush1.bf16.msra.mxu1 %v6321_v51 }
 0x7a6   :  { %3083 = vmatprep.subr.bf16.mxu1 %v6322_v57 }
 0x7a9   :  { %3084 = vmatpush1.bf16.msra.mxu1 %v6323_v59 }
 0x7ac   :  { %3102 = vmatmul.mubr.bf16.vlgmr.msra.gmra.mrb[64].mxu1 %v5418_v43 }
 0x7bf   :  { %v2857_v35 = vpop.f32.mrb[40].mxu1 }
 0x7c0   :  { %v2859_v63 = vpop.f32.mrb[41].mxu1 }
 0x7c1   :  { %v3573_v5 = vpack.c.bf16 %v2859_v63, %v2857_v35  ;;  %v2861_v9 = vpop.f32.mrb[42].mxu1 }
 0x7c2   :  { %v2862_v45 = vpop.f32.mrb[43].mxu1 }
 0x7c3   :  { %3247 = vst [vmem:[%s5741_s3 + $0x48] sm:$0xff] %v3573_v5 }
 0x7df   :  { %v2898_v29 = vpop.f32.mrb[44].mxu1 }
 0x7e0   :  { %v2900_v39 = vpop.f32.mrb[45].mxu1 }
 0x7e1   :  { %v3574_v60 = vpack.c.bf16 %v2900_v39, %v2898_v29  ;;  %v2902_v33 = vpop.f32.mrb[46].mxu1 }
 0x7e2   :  { %v2903_v25 = vpop.f32.mrb[47].mxu1 }
 0x7e3   :  { %3248 = vst [vmem:[%s5741_s3 + $0x50] sm:$0xff] %v3574_v60 }
 0x7ff   :  { %v2939_v13 = vpop.f32.mrb[48].mxu1 }
 0x800   :  { %v2941_v43 = vpop.f32.mrb[49].mxu1 }
 0x801   :  { %v3575_v21 = vpack.c.bf16 %v2941_v43, %v2939_v13  ;;  %v2943_v2 = vpop.f32.mrb[50].mxu1 }
 0x802   :  { %v2944_v62 = vpop.f32.mrb[51].mxu1 }
 0x803   :  { %3249 = vst [vmem:[%s5741_s3 + $0x58] sm:$0xff] %v3575_v21 }
 0x81f   :  { %v2980_v10 = vpop.f32.mrb[52].mxu1 }
 0x820   :  { %v2982_v52 = vpop.f32.mrb[53].mxu1 }
 0x821   :  { %v3576_v41 = vpack.c.bf16 %v2982_v52, %v2980_v10  ;;  %v2984_v31 = vpop.f32.mrb[54].mxu1 }
 0x822   :  { %v2985_v55 = vpop.f32.mrb[55].mxu1 }
 0x823   :  { %3250 = vst [vmem:[%s5741_s3 + $0x60] sm:$0xff] %v3576_v41 }
 0x83f   :  { %v3021_v36 = vpop.f32.mrb[56].mxu1 }
 0x840   :  { %v3023_v48 = vpop.f32.mrb[57].mxu1 }
 0x841   :  { %v3577_v20 = vpack.c.bf16 %v3023_v48, %v3021_v36  ;;  %v3025_v1 = vpop.f32.mrb[58].mxu1 }
 0x842   :  { %v3026_v7 = vpop.f32.mrb[59].mxu1 }
 0x843   :  { %3251 = vst [vmem:[%s5741_s3 + $0x68] sm:$0xff] %v3577_v20 }
 0x85f   :  { %v3062_v37 = vpop.f32.mrb[60].mxu1 }
 0x860   :  { %v3064_v61 = vpop.f32.mrb[61].mxu1 }
 0x861   :  { %v3578_v14 = vpack.c.bf16 %v3064_v61, %v3062_v37  ;;  %v3066_v54 = vpop.f32.mrb[62].mxu1 }
 0x862   :  { %v3067_v38 = vpop.f32.mrb[63].mxu1 }
 0x863   :  { %3252 = vst [vmem:[%s5741_s3 + $0x70] sm:$0xff] %v3578_v14 }
 0x87f   :  { %v3103_v11 = vpop.f32.mrb[64].mxu1 }
 0x880   :  { %v3105_v53 = vpop.f32.mrb[65].mxu1 }
 0x881   :  { %v3579_v28 = vpack.c.bf16 %v3105_v53, %v3103_v11  ;;  %v3107_v17 = vpop.f32.mrb[66].mxu1 }
 0x882   :  { %v3108_v34 = vpop.f32.mrb[67].mxu1 }
 0x883   :  { %3253 = vst [vmem:[%s5741_s3 + $0x78] sm:$0xff] %v3579_v28 }

</bundles_post_ra>
